<compile_context>
chip_gen: v6e
topology: v6e:2x2x1
jax: 0.10.0
libtpu: 0.0.40
codegen_flags: <defaults>
</compile_context>

<pallas_src>
import functools

import jax
import jax.numpy as jnp
from jax import lax
from jax.experimental import pallas as pl
from jax.experimental.pallas import tpu as pltpu


def _round_up(v, m):
    return (v + m - 1) // m * m


def _dropout_keep_masks(shape, seed_u32, col_offset):
    """One stateless lowbias32 hash over a [features, batch_tile] block; the two
    dropout layers' Bernoulli(0.5) keep-masks are independent bits of the
    finalized value (computed ONCE per tile -> half the VALU work of hashing twice)."""
    r = lax.broadcasted_iota(jnp.int32, shape, 0).astype(jnp.uint32)   # feature idx
    c = lax.broadcasted_iota(jnp.int32, shape, 1).astype(jnp.uint32)   # local batch idx
    c = c + col_offset                                                 # global batch idx
    z = (r * jnp.uint32(0x9E3779B1)) ^ (c * jnp.uint32(0x85EBCA77))
    z = z ^ (seed_u32 * jnp.uint32(0x27D4EB2F))
    # lowbias32 finalizer
    z = z ^ (z >> 16)
    z = z * jnp.uint32(0x7FEB352D)
    z = z ^ (z >> 15)
    z = z * jnp.uint32(0x846CA68B)
    z = z ^ (z >> 16)
    keep1 = (z & jnp.uint32(1 << 8)) != 0
    keep2 = (z & jnp.uint32(1 << 24)) != 0
    return keep1, keep2


def _fcn_kernel(training,
                seed_ref,                                  # scalar-prefetch (SMEM)
                x_ref, w1_ref, b1_ref, w2_ref, b2_ref, w3_ref, b3_ref,
                o_ref):
    tb = o_ref.shape[-1]
    h1n = w1_ref.shape[0]
    h2n = w2_ref.shape[0]

    if training:
        seed_u32 = seed_ref[0].astype(jnp.uint32)
        col_off = (pl.program_id(0) * tb).astype(jnp.uint32)
        keep1, keep2 = _dropout_keep_masks((max(h1n, h2n), tb), seed_u32, col_off)

    x_row = x_ref[...].reshape(1, tb)                      # [1, TB] lane-dense input row

    # fc1: Linear(1 -> H).  K=1 contraction is degenerate on the MXU -> VPU broadcast.
    h1 = w1_ref[...] * x_row + b1_ref[...]                 # [H1, TB] f32
    if training:
        # Dropout(0.5): pure select; the 1/(1-p)=2 scale is folded into w2 in the wrapper.
        # TODO(synk): torch's exact dropout RNG stream cannot be reproduced; only the
        # distributional semantics (Bernoulli(0.5) mask, 1/(1-p) scaling) are matched.
        h1 = jnp.where(keep1[:h1n], h1, 0.0)
    h1 = jnp.maximum(h1, 0.0)                              # ReLU

    # fc2: Linear(H -> H) on the MXU.  Operands in w2's dtype (bf16 by default),
    # f32 accumulation; elementwise work stays f32 (v5e has no bf16 VPU).
    h2 = jnp.dot(w2_ref[...], h1.astype(w2_ref.dtype),
                 preferred_element_type=jnp.float32) + b2_ref[...]
    if training:
        h2 = jnp.where(keep2[:h2n], h2, 0.0)               # scale folded into w3
    h2 = jnp.maximum(h2, 0.0)

    # fc3: Linear(H -> 1).  N=1 -> elementwise multiply + cross-sublane reduce (XLU);
    # result is naturally a lane-dense [1, TB] row.  b3 is an SMEM scalar.
    y = jnp.sum(h2 * w3_ref[...], axis=0, keepdims=True) + b3_ref[0]
    o_ref[...] = y.reshape(o_ref.shape).astype(o_ref.dtype)


def _choose_tile(B, tile_batch):
    """Lane-aligned batch tile.  Big enough to amortize the ~0.35 us grid-step
    overhead, capped for v7x's 64 MiB VMEM (f32 temporaries are ~TB KiB each),
    and split into >=2 tiles when possible so the 'parallel' batch axis can
    shard across v7x's two TensorCores."""
    tile_batch = min(max(tile_batch, 128), 8192)           # VMEM-safe soft cap
    TB = _round_up(min(tile_batch, B), 128)
    if _round_up(B, TB) // TB == 1 and B > 128:
        TB = min(TB, _round_up((B + 1) // 2, 128))         # ensure nt >= 2 (v7x megacore)
    Bp = _round_up(B, TB)
    return TB, Bp, Bp // TB


def fcn_forward(x, params, *, training=False, seed=0, tile_batch=2048,
                use_bf16_fc2=True):
    """Fused FCN forward.  x: [B, 1] f32.  params in PyTorch [out, in] orientation.
    NOTE: use_bf16_fc2=True makes fc2 bf16xbf16 with f32 accumulation (explicit
    precision trade-off vs PyTorch's f32 Linear)."""
    w1, b1, w2, b2, w3, b3 = params
    B, in_size = x.shape
    assert in_size == 1 and w3.shape[0] == 1, "FCN spec uses input_size=output_size=1"
    h1u, h2u = w1.shape[0], w2.shape[0]

    H1 = _round_up(h1u, 128)                               # 200 -> 256 (lane-aligned)
    H2 = _round_up(h2u, 128)
    TB, Bp, nt = _choose_tile(B, tile_batch)

    f32 = jnp.float32
    # Zero-padding is numerically exact: padded units stay 0 through the net.
    w1p = jnp.zeros((H1, 1), f32).at[:h1u, :].set(w1.astype(f32))
    b1p = jnp.zeros((H1, 1), f32).at[:h1u, 0].set(b1.astype(f32))
    w2p = jnp.zeros((H2, H1), f32).at[:h2u, :h1u].set(w2.astype(f32))
    b2p = jnp.zeros((H2, 1), f32).at[:h2u, 0].set(b2.astype(f32))
    w3p = jnp.zeros((H2, 1), f32).at[:h2u, 0].set(w3[0].astype(f32))
    b3p = b3.reshape(1).astype(f32)                        # SMEM scalar
    if training:
        # Fold the two Dropout(0.5) 1/(1-p)=2 scales into the *next* layer's weights
        # (exact: power of two; ReLU(2h)=2ReLU(h)).  Biases are NOT scaled.
        w2p = w2p * 2.0
        w3p = w3p * 2.0
    if use_bf16_fc2:
        w2p = w2p.astype(jnp.bfloat16)                     # MXU-native operands, f32 acc

    # Lane-dense batch layout: [num_tiles, 1, TB].
    xp = jnp.zeros((Bp, 1), f32).at[:B, :].set(x.astype(f32))
    x3 = xp.reshape(nt, 1, TB)

    seed_arr = jnp.asarray([seed], dtype=jnp.int32)        # runtime scalar: no retrace per seed

    kernel = functools.partial(_fcn_kernel, bool(training))
    out3 = pl.pallas_call(
        kernel,
        out_shape=jax.ShapeDtypeStruct((nt, 1, TB), f32),
        grid_spec=pltpu.PrefetchScalarGridSpec(
            num_scalar_prefetch=1,                         # seed -> SMEM, passed to index_maps
            grid=(nt,),
            in_specs=[
                pl.BlockSpec((1, 1, TB), lambda i, seed: (i, 0, 0)),   # x tile (pipelined)
                pl.BlockSpec((H1, 1), lambda i, seed: (0, 0)),         # w1  (VMEM-resident)
                pl.BlockSpec((H1, 1), lambda i, seed: (0, 0)),         # b1
                pl.BlockSpec((H2, H1), lambda i, seed: (0, 0)),        # w2
                pl.BlockSpec((H2, 1), lambda i, seed: (0, 0)),         # b2
                pl.BlockSpec((H2, 1), lambda i, seed: (0, 0)),         # w3
                pl.BlockSpec(memory_space=pltpu.MemorySpace.SMEM),     # b3 scalar
            ],
            out_specs=pl.BlockSpec((1, 1, TB), lambda i, seed: (i, 0, 0)),
        ),
        compiler_params=pltpu.CompilerParams(
            dimension_semantics=("parallel",),             # batch tiles shard across TCs (v7x)
        ),
    )(seed_arr, x3, w1p, b1p, w2p, b2p, w3p, b3p)

    return out3.reshape(Bp, 1)[:B]


def init_params(key, input_size=1, fc1_units=200, fc2_units=200, output_size=1):
    """PyTorch-default Linear init: U(-1/sqrt(fan_in), 1/sqrt(fan_in)); weights stored
    in PyTorch [out_features, in_features] orientation."""
    def linear(k, fan_in, fan_out):
        kw, kb = jax.random.split(k)
        bound = fan_in ** -0.5
        w = jax.random.uniform(kw, (fan_out, fan_in), jnp.float32, -bound, bound)
        b = jax.random.uniform(kb, (fan_out,), jnp.float32, -bound, bound)
        return w, b

    k1, k2, k3 = jax.random.split(key, 3)
    w1, b1 = linear(k1, input_size, fc1_units)
    w2, b2 = linear(k2, fc1_units, fc2_units)
    w3, b3 = linear(k3, fc2_units, output_size)
    return (w1, b1, w2, b2, w3, b3)


def fcn_reference(x, params, *, fc2_bf16=False):
    """Plain-JAX eval-mode reference (dropout = identity)."""
    w1, b1, w2, b2, w3, b3 = params
    h1 = jnp.maximum(x @ w1.T + b1, 0.0)
    if fc2_bf16:
        z2 = jnp.dot(h1.astype(jnp.bfloat16), w2.T.astype(jnp.bfloat16),
                     preferred_element_type=jnp.float32)
    else:
        z2 = jnp.dot(h1, w2.T, precision=jax.lax.Precision.HIGHEST)
    h2 = jnp.maximum(z2 + b2, 0.0)
    return jnp.dot(h2, w3.T, precision=jax.lax.Precision.HIGHEST) + b3


if __name__ == "__main__":
    key = jax.random.PRNGKey(0)
    pkey, xkey = jax.random.split(key)

    params = init_params(pkey, input_size=1, fc1_units=200, fc2_units=200, output_size=1)
    B = 1000                                  # non-multiple of tile; exercises padding & nt>=2 split
    x = jax.random.normal(xkey, (B, 1), jnp.float32)

    # Eval mode, full-f32 path: sanity check vs plain-JAX reference.
    y32 = jax.block_until_ready(
        fcn_forward(x, params, training=False, use_bf16_fc2=False))
    r32 = fcn_reference(x, params, fc2_bf16=False)
    assert y32.shape == (B, 1)
    assert jnp.allclose(y32, r32, atol=2e-2, rtol=2e-2), "f32 path mismatch vs reference"

    # Eval mode, default bf16-fc2 fast path: check vs matching-precision reference.
    ybf = jax.block_until_ready(
        fcn_forward(x, params, training=False, use_bf16_fc2=True))
    rbf = fcn_reference(x, params, fc2_bf16=True)
    assert ybf.shape == (B, 1)
    assert jnp.allclose(ybf, rbf, atol=2e-3, rtol=2e-3), "bf16 path mismatch vs reference"

    # Small batch (exercises the nt>=2 tile split path at a different TB).
    xs = x[:300]
    ys = jax.block_until_ready(fcn_forward(xs, params, training=False, use_bf16_fc2=False))
    assert ys.shape == (300, 1)
    assert jnp.allclose(ys, r32[:300], atol=2e-2, rtol=2e-2), "small-batch mismatch"

    # Training mode: runtime-scalar seed (no retrace per seed), single-hash dropout,
    # 2x scale folded into w2/w3.
    ytr_a = jax.block_until_ready(fcn_forward(x, params, training=True, seed=1234))
    ytr_b = jax.block_until_ready(fcn_forward(x, params, training=True, seed=4321))
    assert ytr_a.shape == (B, 1)
    assert bool(jnp.all(jnp.isfinite(ytr_a))) and bool(jnp.all(jnp.isfinite(ytr_b)))
    assert bool(jnp.any(ytr_a != ytr_b)), "different seeds must give different dropout masks"

    print("KERNEL_OK")
</pallas_src>

<mosaic_0001>
module attributes {stable_mosaic.version = 11 : i64} {
  func.func @_fcn_kernel(%arg0: i32, %arg1: memref<1xi32, #tpu.memory_space<smem>>, %arg2: memref<1x1x512xf32, #tpu.memory_space<vmem>>, %arg3: memref<256x1xf32, #tpu.memory_space<vmem>>, %arg4: memref<256x1xf32, #tpu.memory_space<vmem>>, %arg5: memref<256x256xf32, #tpu.memory_space<vmem>>, %arg6: memref<256x1xf32, #tpu.memory_space<vmem>>, %arg7: memref<256x1xf32, #tpu.memory_space<vmem>>, %arg8: memref<1xf32, #tpu.memory_space<smem>>, %arg9: memref<1x1x512xf32, #tpu.memory_space<vmem>>) attributes {dimension_semantics = [#tpu.dimension_semantics<parallel>], iteration_bounds = array<i64: 2>, scalar_prefetch = 1 : i64, scratch_operands = 0 : i64, tpu.core_type = #tpu.core_type<tc>, window_params = [{transform_indices = @transform_0, window_bounds = array<i64: 1, 1, 512>}, {pipeline_mode = #tpu.pipeline_mode<synchronous>, transform_indices = @transform_1, window_bounds = array<i64: 256, 1>}, {pipeline_mode = #tpu.pipeline_mode<synchronous>, transform_indices = @transform_2, window_bounds = array<i64: 256, 1>}, {pipeline_mode = #tpu.pipeline_mode<synchronous>, transform_indices = @transform_3, window_bounds = array<i64: 256, 256>}, {pipeline_mode = #tpu.pipeline_mode<synchronous>, transform_indices = @transform_4, window_bounds = array<i64: 256, 1>}, {pipeline_mode = #tpu.pipeline_mode<synchronous>, transform_indices = @transform_5, window_bounds = array<i64: 256, 1>}, {transform_indices = @transform_6, window_bounds = array<i64: 1>}, {transform_indices = @transform_7, window_bounds = array<i64: 1, 1, 512>}]} {
    %c0 = arith.constant 0 : index
    %c0_0 = arith.constant 0 : index
    %c0_1 = arith.constant 0 : index
    %0 = vector.load %arg2[%c0, %c0_0, %c0_1] : memref<1x1x512xf32, #tpu.memory_space<vmem>>, vector<1x1x512xf32>
    %1 = vector.shape_cast %0 : vector<1x1x512xf32> to vector<1x512xf32>
    %c0_2 = arith.constant 0 : index
    %c0_3 = arith.constant 0 : index
    %2 = vector.load %arg3[%c0_2, %c0_3] : memref<256x1xf32, #tpu.memory_space<vmem>>, vector<256x1xf32>
    %3 = vector.broadcast %2 : vector<256x1xf32> to vector<256x512xf32>
    %4 = vector.broadcast %1 : vector<1x512xf32> to vector<256x512xf32>
    %5 = arith.mulf %3, %4 : vector<256x512xf32>
    %c0_4 = arith.constant 0 : index
    %c0_5 = arith.constant 0 : index
    %6 = vector.load %arg4[%c0_4, %c0_5] : memref<256x1xf32, #tpu.memory_space<vmem>>, vector<256x1xf32>
    %7 = vector.broadcast %6 : vector<256x1xf32> to vector<256x512xf32>
    %8 = arith.addf %5, %7 : vector<256x512xf32>
    %cst = arith.constant 0.000000e+00 : f32
    %9 = vector.broadcast %cst : f32 to vector<256x512xf32>
    %10 = arith.maximumf %8, %9 : vector<256x512xf32>
    %c0_6 = arith.constant 0 : index
    %c0_7 = arith.constant 0 : index
    %11 = vector.load %arg5[%c0_6, %c0_7] : memref<256x256xf32, #tpu.memory_space<vmem>>, vector<256x256xf32>
    %cst_8 = arith.constant dense<0.000000e+00> : vector<256x512xf32>
    %12 = tpu.matmul %11, %10, %cst_8 {dimension_numbers = #tpu.dot_dimension_numbers<[1], [0], [0], [1], [0, 0, 1, 1], [], []>} : vector<256x256xf32>, vector<256x512xf32>, vector<256x512xf32> -> vector<256x512xf32>
    %c0_9 = arith.constant 0 : index
    %c0_10 = arith.constant 0 : index
    %13 = vector.load %arg6[%c0_9, %c0_10] : memref<256x1xf32, #tpu.memory_space<vmem>>, vector<256x1xf32>
    %14 = vector.broadcast %13 : vector<256x1xf32> to vector<256x512xf32>
    %15 = arith.addf %12, %14 : vector<256x512xf32>
    %cst_11 = arith.constant 0.000000e+00 : f32
    %16 = vector.broadcast %cst_11 : f32 to vector<256x512xf32>
    %17 = arith.maximumf %15, %16 : vector<256x512xf32>
    %c0_12 = arith.constant 0 : index
    %c0_13 = arith.constant 0 : index
    %18 = vector.load %arg7[%c0_12, %c0_13] : memref<256x1xf32, #tpu.memory_space<vmem>>, vector<256x1xf32>
    %19 = vector.broadcast %18 : vector<256x1xf32> to vector<256x512xf32>
    %20 = arith.mulf %17, %19 : vector<256x512xf32>
    %cst_14 = arith.constant dense<0.000000e+00> : vector<512xf32>
    %21 = vector.multi_reduction <add>, %20, %cst_14 [0] : vector<256x512xf32> to vector<512xf32>
    %22 = vector.shape_cast %21 : vector<512xf32> to vector<1x512xf32>
    %c0_15 = arith.constant 0 : index
    %23 = memref.load %arg8[%c0_15] : memref<1xf32, #tpu.memory_space<smem>>
    %24 = vector.broadcast %23 : f32 to vector<1x512xf32>
    %25 = arith.addf %22, %24 : vector<1x512xf32>
    %26 = vector.shape_cast %25 : vector<1x512xf32> to vector<1x1x512xf32>
    %c0_16 = arith.constant 0 : index
    %c0_17 = arith.constant 0 : index
    %c0_18 = arith.constant 0 : index
    %27 = vector.load %arg9[%c0_16, %c0_17, %c0_18] : memref<1x1x512xf32, #tpu.memory_space<vmem>>, vector<1x1x512xf32>
    tpu.vector_store %arg9[%c0_16, %c0_17, %c0_18], %26 {strides = array<i32>} : memref<1x1x512xf32, #tpu.memory_space<vmem>>, vector<1x1x512xf32>,
    return
  }
  func.func @transform_0(%arg0: i32, %arg1: memref<1xi32, #tpu.memory_space<smem>>) -> (i32, i32, i32) {
    %c0_i32 = arith.constant 0 : i32
    %c0_i32_0 = arith.constant 0 : i32
    %c0_i32_1 = arith.constant 0 : i32
    return %arg0, %c0_i32, %c0_i32_0 : i32, i32, i32
  }
  func.func @transform_1(%arg0: i32, %arg1: memref<1xi32, #tpu.memory_space<smem>>) -> (i32, i32) {
    %c0_i32 = arith.constant 0 : i32
    %c0_i32_0 = arith.constant 0 : i32
    %c0_i32_1 = arith.constant 0 : i32
    return %c0_i32, %c0_i32_0 : i32, i32
  }
  func.func @transform_2(%arg0: i32, %arg1: memref<1xi32, #tpu.memory_space<smem>>) -> (i32, i32) {
    %c0_i32 = arith.constant 0 : i32
    %c0_i32_0 = arith.constant 0 : i32
    %c0_i32_1 = arith.constant 0 : i32
    return %c0_i32, %c0_i32_0 : i32, i32
  }
  func.func @transform_3(%arg0: i32, %arg1: memref<1xi32, #tpu.memory_space<smem>>) -> (i32, i32) {
    %c0_i32 = arith.constant 0 : i32
    %c0_i32_0 = arith.constant 0 : i32
    %c0_i32_1 = arith.constant 0 : i32
    return %c0_i32, %c0_i32_0 : i32, i32
  }
  func.func @transform_4(%arg0: i32, %arg1: memref<1xi32, #tpu.memory_space<smem>>) -> (i32, i32) {
    %c0_i32 = arith.constant 0 : i32
    %c0_i32_0 = arith.constant 0 : i32
    %c0_i32_1 = arith.constant 0 : i32
    return %c0_i32, %c0_i32_0 : i32, i32
  }
  func.func @transform_5(%arg0: i32, %arg1: memref<1xi32, #tpu.memory_space<smem>>) -> (i32, i32) {
    %c0_i32 = arith.constant 0 : i32
    %c0_i32_0 = arith.constant 0 : i32
    %c0_i32_1 = arith.constant 0 : i32
    return %c0_i32, %c0_i32_0 : i32, i32
  }
  func.func @transform_6(%arg0: i32, %arg1: memref<1xi32, #tpu.memory_space<smem>>) -> i32 {
    %c0_i32 = arith.constant 0 : i32
    %c0_i32_0 = arith.constant 0 : i32
    return %c0_i32 : i32
  }
  func.func @transform_7(%arg0: i32, %arg1: memref<1xi32, #tpu.memory_space<smem>>) -> (i32, i32, i32) {
    %c0_i32 = arith.constant 0 : i32
    %c0_i32_0 = arith.constant 0 : i32
    %c0_i32_1 = arith.constant 0 : i32
    return %arg0, %c0_i32, %c0_i32_0 : i32, i32, i32
  }
}

</mosaic_0001>

<bundles_post_ra>
// kernel: tpu_custom_call.1
= control target key start
LH: loop header
LB: loop body
LE: loop exit
PB: predicated region body
PF: predicated region fallthrough
CT: control target
= control target key end

     0   :  { %s3805_s0 = inlined_call_operand.<no memory space> [shape: s32[1], index: 0, kind: input, shape index: {}]   ;;  %s3806_s1 = inlined_call_operand.vmem [shape: f32[2,1,512], index: 1, kind: input, shape index: {}]   ;;  %s3807_s2 = inlined_call_operand.vmem [shape: f32[256,1], index: 2, kind: input, shape index: {}]   ;;  %s3808_s3 = inlined_call_operand.vmem [shape: f32[256,1], index: 3, kind: input, shape index: {}]   ;;  %s3809_s4 = inlined_call_operand.vmem [shape: f32[256,256], index: 4, kind: input, shape index: {}]   ;;  %s3810_s5 = inlined_call_operand.vmem [shape: f32[256,1], index: 5, kind: input, shape index: {}]   ;;  %s3811_s6 = inlined_call_operand.vmem [shape: f32[256,1], index: 6, kind: input, shape index: {}]   ;;  %s3812_s7 = inlined_call_operand.<no memory space> [shape: f32[1], index: 7, kind: input, shape index: {}]   ;;  %s3813_s8 = inlined_call_operand.hbm [shape: f32[2,1,512], index: 8, kind: output, shape index: {}]  }
   0x1   :  { %14 = sst [smem:[#allocation4]] %s3812_s7 }
   0x2   :  { %15 = vsyncpa [#allocation6], 0 }
   0x3   :  { %17 = vsyncpa [#allocation6 + $0x1], 0  ;;  %s2715_s28 = smov 0   ;;  %s2717_s29 = smov 0  }
   0x4   :  { %s2719_s30 = smov 0   ;;  %s2721_s9 = smov 0  }
   0x5 LB: > { %s2736_s7 = sadd.s32 4294967295, %s2662_s9   ;;  %s2547_s10 = sadd.s32 4294967294, %s2662_s9   ;;  %s2662_s9 = sphi %s2721_s9, %s3819_s9   ;;  %s2658_s30 = sphi %s2719_s30, %s3818_s30   ;;  %s2654_s29 = sphi %s2717_s29, %s3817_s29   ;;  %s2650_s28 = sphi %s2715_s28, %s3816_s28  }
   0x6   : > { %s2740_s11 = sadd.s32 1, %s2662_s9   ;;  %s182_s12 = sadd.s32 1, %s2658_s30 }
   0x7   : > { %s179_s13 = ssub.s32 %s2662_s9, %s2740_s11  ;;  %p192_p0 = scmp.ne.s32.totalorder %s2658_s30, %s2654_s29 }
   0x8   : > { %p180_p1 = scmp.eq.s32.totalorder %s179_s13, 0  ;;  %p193_p2 = scmp.eq.s32.totalorder %s2736_s7, 1 }
   0x9   : > { %p198_p3 = scmp.ne.s32.totalorder %s2654_s29, %s2650_s28  ;;  %p199_p4 = scmp.eq.s32.totalorder %s2547_s10, 1 }
   0xa   : > { %s2751_s14 = scalar_select %p180_p1, %s2658_s30, %s182_s12  }
   0xb   : > { %p2753_p5 = por %p193_p2, %p192_p0  ;;  %p2757_p6 = por %p199_p4, %p198_p3 }
   0xc   : > { %p2550_p7 = scmp.ge.s32.totalorder %s2662_s9, 1  ;;  %p242_p8 = scmp.lt.s32.totalorder %s2662_s9, 3 }
   0xe   : > { %p243_p9 = pnand %p2550_p7, %p242_p8 }
   0xf   : > { %p273_p10 = scmp.lt.s32.totalorder (!%p243_p9), %s2736_s7, 1  ;;  %s2433_s13 = sld [smem:[#allocation4]] (!%p243_p9) }
  0x10   : > { %246 = sbr.rel (%p243_p9) target bundleno = 644 (0x284), region = 48  ;;  %s270_s17 = sand.u32 (!%p243_p9), 1, %s2654_s29  }
  0x11   : > { %s2551_s18 = sshll.u32 (!%p243_p9), %s270_s17, 2  ;;  %s2558_s19 = sshll.u32 (!%p243_p9), %s2736_s7, 6 }
  0x12   : > { %s272_s20 = scalar_lea.vmem (!%p243_p9), [#allocation5], %s2551_s18  ;;  %s2666_s26 = smov (!%p243_p9), [#allocation5]  }
  0x13   : > { %s2488_s21 = sshll.u32 (!%p243_p9), %s272_s20, 4  ;;  %s2489_s21 = int_to_ptr.vmem [resolvable:$true] %s2488_s21 }
  0x14   : > { %s2602_s25 = scalar_lea.vmem (!%p243_p9), %s2489_s21, 64 }
  0x15   : > { %v280_v0 = vld [vmem:[%s3807_s2 + $0x10] sm:$0xff]  ;;  %v278_v1 = vld [vmem:[%s3807_s2] sm:$0xff]  ;;  %v2664_v2 = vmov 0   ;;  %v281_v3 = vld [vmem:[%s3807_s2 + $0x18] sm:$0xff]  ;;  %s274_s24 = scalar_select %p273_p10, %s2736_s7, 1 }
  0x16   : > { %2601 = vset.pattern.permute.xlu1 %v2664_v2  ;;  %2600 = vset.pattern.permute.xlu0 %v2664_v2  ;;  %v279_v4 = vld [vmem:[%s3807_s2 + $0x8] sm:$0xff]  ;;  %v282_v6 = vld [vmem:[%s3807_s2 + $0x20] sm:$0xff]  ;;  %v285_v7 = vld [vmem:[%s3807_s2 + $0x38] sm:$0xff]  ;;  %p2603_p11 = scmp.ne.s32.totalorder %s2489_s21, %s2602_s25  ;;  %s2606_s7 = sshll.u32 %s2666_s26, 4  ;;  %s2607_s7 = int_to_ptr.vmem [resolvable:$false] %s2606_s7 }
  0x17   : > { %322 = vperm.xlu1 %2601, %v280_v0   ;;  %312 = vperm.xlu0 %2600, %v278_v1   ;;  %v283_v5 = vld [vmem:[%s3807_s2 + $0x28] sm:$0xff]  ;;  %v284_v8 = vld [vmem:[%s3807_s2 + $0x30] sm:$0xff]  ;;  %v293_v10 = vld [vmem:[%s3807_s2 + $0x78] sm:$0xff]  ;;  %s2552_s12 = sshll.u32 %s274_s24, 2  ;;  %s2474_s24 = scalar_lea.sflag [#allocation6], %s270_s17 }
  0x18   : > { %v292_v9 = vld [vmem:[%s3807_s2 + $0x70] sm:$0xff]  ;;  %v291_v11 = vld [vmem:[%s3807_s2 + $0x68] sm:$0xff]  ;;  %v634_v12 = vld [vmem:[%s3808_s3 + $0x78] sm:$0xff]  ;;  %s276_s0 = scalar_lea.vmem %s3806_s1, %s2552_s12  ;;  %p2604_p12 = pnand %p2603_p11, %p2753_p5 }
  0x19   : > { %v290_v13 = vld [vmem:[%s3807_s2 + $0x60] sm:$0xff]  ;;  %v633_v14 = vld [vmem:[%s3808_s3 + $0x70] sm:$0xff]  ;;  %v289_v15 = vld [vmem:[%s3807_s2 + $0x58] sm:$0xff]  ;;  %s2608_s27 = scalar_lea.vmem %s2607_s7, 128  ;;  %p2609_p0 = scmp.lt.s32.totalorder %s2489_s21, %s2607_s7 }
  0x1a   : > { %v632_v16 = vld [vmem:[%s3808_s3 + $0x68] sm:$0xff]  ;;  %v288_v17 = vld [vmem:[%s3807_s2 + $0x50] sm:$0xff]  ;;  %v631_v18 = vld [vmem:[%s3808_s3 + $0x60] sm:$0xff]  ;;  %p2605_p13 = pneg %p2604_p12  ;;  %p2610_p1 = scmp.lt.s32.totalorder %s2608_s27, %s2602_s25 }
  0x1b   : > { %327 = vperm.xlu1 %2601, %v281_v3   ;;  %317 = vperm.xlu0 %2600, %v279_v4   ;;  %v287_v19 = vld [vmem:[%s3807_s2 + $0x48] sm:$0xff]  ;;  %v630_v20 = vld [vmem:[%s3808_s3 + $0x58] sm:$0xff]  ;;  %v286_v21 = vld [vmem:[%s3807_s2 + $0x40] sm:$0xff] }
  0x1c   : > { %v629_v22 = vld [vmem:[%s3808_s3 + $0x50] sm:$0xff]  ;;  %v627_v23 = vld [vmem:[%s3808_s3 + $0x40] sm:$0xff]  ;;  %v628_v24 = vld [vmem:[%s3808_s3 + $0x48] sm:$0xff]  ;;  %p2611_p2 = por %p2610_p1, %p2609_p0 }
  0x1d   : > { %v625_v25 = vld [vmem:[%s3808_s3 + $0x30] sm:$0xff]  ;;  %v626_v26 = vld [vmem:[%s3808_s3 + $0x38] sm:$0xff]  ;;  %v623_v27 = vld [vmem:[%s3808_s3 + $0x20] sm:$0xff] }
  0x1e   : > { %v624_v28 = vld [vmem:[%s3808_s3 + $0x28] sm:$0xff]  ;;  %v621_v29 = vld [vmem:[%s3808_s3 + $0x10] sm:$0xff]  ;;  %v622_v30 = vld [vmem:[%s3808_s3 + $0x18] sm:$0xff]  ;;  %p2612_p3 = pnand %p2611_p2, %p2605_p13 }
  0x1f   : > { %337 = vperm.xlu1 %2601, %v283_v5   ;;  %332 = vperm.xlu0 %2600, %v282_v6   ;;  %v309_v31 = vld [vmem:[%s3807_s2 + $0xf8] sm:$0xff]  ;;  %v620_v32 = vld [vmem:[%s3808_s3 + $0x8] sm:$0xff]  ;;  %v308_v33 = vld [vmem:[%s3807_s2 + $0xf0] sm:$0xff]  ;;  %v471_v5 = vlaneseq }
  0x20   : > { %v619_v34 = vld [vmem:[%s3808_s3] sm:$0xff]  ;;  %v307_v35 = vld [vmem:[%s3807_s2 + $0xe8] sm:$0xff]  ;;  %v650_v36 = vld [vmem:[%s3808_s3 + $0xf8] sm:$0xff] }
  0x21   : > { %v306_v37 = vld [vmem:[%s3807_s2 + $0xe0] sm:$0xff]  ;;  %v649_v38 = vld [vmem:[%s3808_s3 + $0xf0] sm:$0xff]  ;;  %v305_v39 = vld [vmem:[%s3807_s2 + $0xd8] sm:$0xff]  ;;  %vm2470_vm0 = vcmp.lt.s32.totalorder %v471_v5, 512 }
  0x22   : > { %v648_v40 = vld [vmem:[%s3808_s3 + $0xe8] sm:$0xff]  ;;  %v304_v41 = vld [vmem:[%s3807_s2 + $0xd0] sm:$0xff]  ;;  %v647_v42 = vld [vmem:[%s3808_s3 + $0xe0] sm:$0xff] }
  0x23   : > { %347 = vperm.xlu1 %2601, %v285_v7   ;;  %342 = vperm.xlu0 %2600, %v284_v8   ;;  %v303_v43 = vld [vmem:[%s3807_s2 + $0xc8] sm:$0xff]  ;;  %v646_v44 = vld [vmem:[%s3808_s3 + $0xd8] sm:$0xff]  ;;  %v302_v45 = vld [vmem:[%s3807_s2 + $0xc0] sm:$0xff] }
  0x24   : > { %v645_v46 = vld [vmem:[%s3808_s3 + $0xd0] sm:$0xff]  ;;  %v301_v47 = vld [vmem:[%s3807_s2 + $0xb8] sm:$0xff]  ;;  %v644_v48 = vld [vmem:[%s3808_s3 + $0xc8] sm:$0xff] }
  0x25   : > { %v300_v49 = vld [vmem:[%s3807_s2 + $0xb0] sm:$0xff]  ;;  %v643_v50 = vld [vmem:[%s3808_s3 + $0xc0] sm:$0xff]  ;;  %v299_v51 = vld [vmem:[%s3807_s2 + $0xa8] sm:$0xff] }
  0x26   : > { %v642_v52 = vld [vmem:[%s3808_s3 + $0xb8] sm:$0xff]  ;;  %v298_v53 = vld [vmem:[%s3807_s2 + $0xa0] sm:$0xff]  ;;  %v641_v54 = vld [vmem:[%s3808_s3 + $0xb0] sm:$0xff] }
  0x27   : > { %382 = vperm.xlu1 %2601, %v292_v9   ;;  %387 = vperm.xlu0 %2600, %v293_v10   ;;  %v297_v55 = vld [vmem:[%s3807_s2 + $0x98] sm:$0xff]  ;;  %v640_v56 = vld [vmem:[%s3808_s3 + $0xa8] sm:$0xff]  ;;  %v296_v57 = vld [vmem:[%s3807_s2 + $0x90] sm:$0xff] }
  0x28   : > { %v639_v58 = vld [vmem:[%s3808_s3 + $0xa0] sm:$0xff]  ;;  %v295_v59 = vld [vmem:[%s3807_s2 + $0x88] sm:$0xff]  ;;  %v638_v60 = vld [vmem:[%s3808_s3 + $0x98] sm:$0xff] }
  0x29   : > { %v294_v61 = vld [vmem:[%s3807_s2 + $0x80] sm:$0xff]  ;;  %v637_v62 = vld [vmem:[%s3808_s3 + $0x90] sm:$0xff]  ;;  %v636_v0 = vld [vmem:[%s3808_s3 + $0x88] sm:$0xff] }
  0x2a   : > { %v635_v63 = vld [vmem:[%s3808_s3 + $0x80] sm:$0xff]  ;;  %v1132_v3 = vld [vmem:[%s3810_s5 + $0x8] sm:$0xff]  ;;  %v1134_v9 = vld [vmem:[%s3810_s5 + $0x18] sm:$0xff] }
  0x2b   : > { %377 = vperm.xlu1 %2601, %v291_v11   ;;  %728 = vperm.xlu0 %2600, %v634_v12   ;;  %v1131_v4 = vld [vmem:[%s3810_s5] sm:$0xff]  ;;  %v1068_v8 = vld [vmem:[%s3809_s4 + $0x8] sm:$0xff]  ;;  %v1133_v10 = vld [vmem:[%s3810_s5 + $0x10] sm:$0xff]  ;;  %v2977_v11 = vshrl.u32 %v471_v5, 7 }
  0x2c   : > { %1387 = vmatprep.mubr.f32.mxu0 %v1068_v8  ;;  %1644 = vmatprep.mubr.f32.mxu1 %v1068_v8 }
  0x2f   : > { %372 = vperm.xlu1 %2601, %v290_v13   ;;  %723 = vperm.xlu0 %2600, %v633_v14   ;;  %v1136_v14 = vld [vmem:[%s3810_s5 + $0x28] sm:$0xff] }
  0x33   : > { %367 = vperm.xlu1 %2601, %v289_v15   ;;  %718 = vperm.xlu0 %2600, %v632_v16   ;;  %v1135_v15 = vld [vmem:[%s3810_s5 + $0x20] sm:$0xff]  ;;  %v477_v16 = vsub.s32 1, %v2977_v11 }
  0x37   : > { %362 = vperm.xlu1 %2601, %v288_v17   ;;  %713 = vperm.xlu0 %2600, %v631_v18   ;;  %v485_v17 = vsub.s32 3, %v2977_v11  ;;  %v277_v18 = vld [vmem:[%s276_s0] sm:$0xf]  ;;  %s2486_s0 = scalar_lea.hbm %s3813_s8, %s2558_s19 }
  0x3b   : > { %357 = vperm.xlu1 %2601, %v287_v19   ;;  %708 = vperm.xlu0 %2600, %v630_v20   ;;  %v473_v19 = vsub.s32 0, %v2977_v11  ;;  %v481_v20 = vsub.s32 2, %v2977_v11 }
  0x3f   : > { %352 = vperm.xlu1 %2601, %v286_v21   ;;  %703 = vperm.xlu0 %2600, %v629_v22  }
  0x43   : > { %693 = vperm.xlu1 %2601, %v627_v23   ;;  %698 = vperm.xlu0 %2600, %v628_v24   ;;  %v1138_v23 = vld [vmem:[%s3810_s5 + $0x38] sm:$0xff]  ;;  %v1137_v24 = vld [vmem:[%s3810_s5 + $0x30] sm:$0xff] }
  0x47   : > { %683 = vperm.xlu1 %2601, %v625_v25   ;;  %688 = vperm.xlu0 %2600, %v626_v26   ;;  %v3004_v25 = vrot.slane %v277_v18, %v477_v16  ;;  %v3006_v26 = vrot.slane %v277_v18, %v485_v17  ;;  %v1143_v16 = vld [vmem:[%s3810_s5 + $0x60] sm:$0xff] }
  0x4b   : > { %673 = vperm.xlu1 %2601, %v623_v27   ;;  %678 = vperm.xlu0 %2600, %v624_v28   ;;  %v3008_v27 = vrot.slane %v277_v18, %v473_v19  ;;  %v3010_v28 = vrot.slane %v277_v18, %v481_v20 }
  0x4f   : > { %663 = vperm.xlu1 %2601, %v621_v29   ;;  %668 = vperm.xlu0 %2600, %v622_v30  }
  0x53   : > { %467 = vperm.xlu1 %2601, %v309_v31   ;;  %658 = vperm.xlu0 %2600, %v620_v32  }
  0x57   : > { %462 = vperm.xlu1 %2601, %v308_v33   ;;  %653 = vperm.xlu0 %2600, %v619_v34  }
  0x5b   : > { %457 = vperm.xlu1 %2601, %v307_v35   ;;  %808 = vperm.xlu0 %2600, %v650_v36   ;;  %v1140_v36 = vld [vmem:[%s3810_s5 + $0x48] sm:$0xff] }
  0x5f   : > { %452 = vperm.xlu1 %2601, %v306_v37   ;;  %803 = vperm.xlu0 %2600, %v649_v38   ;;  %v1139_v37 = vld [vmem:[%s3810_s5 + $0x40] sm:$0xff] }
  0x63   : > { %447 = vperm.xlu1 %2601, %v305_v39   ;;  %798 = vperm.xlu0 %2600, %v648_v40  }
  0x67   : > { %442 = vperm.xlu1 %2601, %v304_v41   ;;  %793 = vperm.xlu0 %2600, %v647_v42  }
  0x6b   : > { %437 = vperm.xlu1 %2601, %v303_v43   ;;  %788 = vperm.xlu0 %2600, %v646_v44  }
  0x6f   : > { %432 = vperm.xlu1 %2601, %v302_v45   ;;  %783 = vperm.xlu0 %2600, %v645_v46  }
  0x73   : > { %427 = vperm.xlu1 %2601, %v301_v47   ;;  %778 = vperm.xlu0 %2600, %v644_v48  }
  0x77   : > { %422 = vperm.xlu1 %2601, %v300_v49   ;;  %773 = vperm.xlu0 %2600, %v643_v50  }
  0x7b   : > { %417 = vperm.xlu1 %2601, %v299_v51   ;;  %768 = vperm.xlu0 %2600, %v642_v52  }
  0x7f   : > { %412 = vperm.xlu1 %2601, %v298_v53   ;;  %763 = vperm.xlu0 %2600, %v641_v54  }
  0x83   : > { %407 = vperm.xlu1 %2601, %v297_v55   ;;  %758 = vperm.xlu0 %2600, %v640_v56   ;;  %v1142_v55 = vld [vmem:[%s3810_s5 + $0x58] sm:$0xff]  ;;  %v1141_v56 = vld [vmem:[%s3810_s5 + $0x50] sm:$0xff] }
  0x87   : > { %402 = vperm.xlu1 %2601, %v296_v57   ;;  %753 = vperm.xlu0 %2600, %v639_v58  }
  0x8b   : > { %397 = vperm.xlu1 %2601, %v295_v59   ;;  %748 = vperm.xlu0 %2600, %v638_v60  }
  0x8f   : > { %392 = vperm.xlu1 %2601, %v294_v61   ;;  %743 = vperm.xlu0 %2600, %v637_v62  }
  0x92   : > { %v323_v1 = vpop.permute.xlu1 %322  ;;  %v2956_v2 = vpop.permute.xlu0 %312 }
  0x93   : > { %733 = vperm.xlu1 %2601, %v635_v63   ;;  %738 = vperm.xlu0 %2600, %v636_v0   ;;  %v3013_v31 = vmul.f32 %v3004_v25, %v323_v1  ;;  %v3016_v32 = vmul.f32 %v3006_v26, %v323_v1  ;;  %v3022_v34 = vmul.f32 %v3008_v27, %v323_v1 }
  0x94   : > { %v3025_v35 = vmul.f32 %v3010_v28, %v323_v1 }
  0x96   : > { %v328_v6 = vpop.permute.xlu1 %327  ;;  %v2965_v7 = vpop.permute.xlu0 %317 }
  0x97   : > { %1170 = vperm.xlu1 %2601, %v1132_v3   ;;  %1165 = vperm.xlu0 %2600, %v1131_v4   ;;  %v3019_v33 = vmul.f32 %v3004_v25, %v328_v6  ;;  %v3034_v38 = vmul.f32 %v3006_v26, %v328_v6  ;;  %v3037_v39 = vmul.f32 %v3008_v27, %v328_v6 }
  0x98   : > { %v3040_v40 = vmul.f32 %v3010_v28, %v328_v6  ;;  %v3044_v41 = vmul.f32 %v3004_v25, %v2965_v7 }
  0x9a   : > { %v338_v12 = vpop.permute.xlu1 %337  ;;  %v2979_v13 = vpop.permute.xlu0 %332 }
  0x9b   : > { %1180 = vperm.xlu1 %2601, %v1134_v9   ;;  %1175 = vperm.xlu0 %2600, %v1133_v10   ;;  %v3050_v45 = vmul.f32 %v3004_v25, %v338_v12  ;;  %v3054_v49 = vmul.f32 %v3006_v26, %v338_v12  ;;  %v3057_v50 = vmul.f32 %v3008_v27, %v338_v12 }
  0x9c   : > { %v3060_v51 = vmul.f32 %v3010_v28, %v338_v12  ;;  %v3072_v60 = vmul.f32 %v3004_v25, %v2979_v13  ;;  %v3082_v9 = vmul.f32 %v3006_v26, %v2979_v13 }
  0x9e   : > { %v2994_v21 = vpop.permute.xlu1 %347  ;;  %v2996_v22 = vpop.permute.xlu0 %342 }
  0x9f   : > { %1190 = vperm.xlu1 %2601, %v1136_v14   ;;  %1185 = vperm.xlu0 %2600, %v1135_v15   ;;  %v3078_v8 = vmul.f32 %v3004_v25, %v2994_v21  ;;  %v1144_v15 = vld [vmem:[%s3810_s5 + $0x68] sm:$0xff] }
  0xa2   : > { %v383_v29 = vpop.permute.xlu1 %382  ;;  %v388_v30 = vpop.permute.xlu0 %387 }
  0xa3   : > { %1200 = vperm.xlu1 %2601, %v1138_v23   ;;  %1195 = vperm.xlu0 %2600, %v1137_v24   ;;  %v552_v42 = vmul.f32 %v3004_v25, %v388_v30  ;;  %v554_v43 = vmul.f32 %v3006_v26, %v388_v30  ;;  %v551_v44 = vmul.f32 %v3008_v27, %v388_v30 }
  0xa4   : > { %v553_v48 = vmul.f32 %v3010_v28, %v388_v30  ;;  %v548_v58 = vmul.f32 %v3004_v25, %v383_v29  ;;  %v550_v59 = vmul.f32 %v3006_v26, %v383_v29  ;;  %v547_v0 = vmul.f32 %v3008_v27, %v383_v29 }
  0xa5   : > { %v549_v6 = vmul.f32 %v3010_v28, %v383_v29 }
  0xa6   : > { %v378_v46 = vpop.permute.xlu1 %377  ;;  %v729_v47 = vpop.permute.xlu0 %728 }
  0xa7   : > { %1210 = vperm.xlu1 %2601, %v1140_v36   ;;  %1205 = vperm.xlu0 %2600, %v1139_v37   ;;  %v872_v52 = vadd.f32 %v729_v47, %v552_v42  ;;  %v874_v53 = vadd.f32 %v729_v47, %v554_v43  ;;  %v871_v54 = vadd.f32 %v729_v47, %v551_v44 }
  0xa8   : > { %v873_v57 = vadd.f32 %v729_v47, %v553_v48  ;;  %v544_v18 = vmul.f32 %v3004_v25, %v378_v46  ;;  %v546_v19 = vmul.f32 %v3006_v26, %v378_v46  ;;  %v543_v29 = vmul.f32 %v3008_v27, %v378_v46 }
  0xa9   : > { %v1000_v61 = vmax.f32 %v872_v52, 0.0  ;;  %v1002_v62 = vmax.f32 %v874_v53, 0.0  ;;  %v999_v63 = vmax.f32 %v871_v54, 0.0  ;;  %v545_v42 = vmul.f32 %v3010_v28, %v378_v46  ;;  %v1146_v53 = vld [vmem:[%s3810_s5 + $0x78] sm:$0xff]  ;;  %v1145_v46 = vld [vmem:[%s3810_s5 + $0x70] sm:$0xff] }
  0xaa   : > { %v373_v1 = vpop.permute.xlu1 %372  ;;  %v724_v3 = vpop.permute.xlu0 %723  ;;  %v1001_v4 = vmax.f32 %v873_v57, 0.0  ;;  %v3096_v43 = vmul.f32 %v3006_v26, %v2994_v21  ;;  %v3100_v44 = vmul.f32 %v3008_v27, %v2994_v21 }
  0xab   : > { %1220 = vperm.xlu1 %2601, %v1142_v55   ;;  %1215 = vperm.xlu0 %2600, %v1141_v56   ;;  %v868_v10 = vadd.f32 %v724_v3, %v548_v58  ;;  %v870_v12 = vadd.f32 %v724_v3, %v550_v59  ;;  %v867_v14 = vadd.f32 %v724_v3, %v547_v0 }
  0xac   : > { %1323 = vmatprep.subr.mxu0 %v1000_v61  ;;  %1580 = vmatprep.subr.mxu1 %v1002_v62  ;;  %v869_v17 = vadd.f32 %v724_v3, %v549_v6  ;;  %v540_v55 = vmul.f32 %v3004_v25, %v373_v1  ;;  %v542_v56 = vmul.f32 %v3006_v26, %v373_v1 }
  0xad   : > { %1324 = vmatpush1.msra.mxu0 %v999_v63  ;;  %1581 = vmatpush1.msra.mxu1 %v1001_v4  ;;  %v996_v20 = vmax.f32 %v868_v10, 0.0  ;;  %v998_v23 = vmax.f32 %v870_v12, 0.0  ;;  %v995_v24 = vmax.f32 %v867_v14, 0.0  ;;  %v539_v61 = vmul.f32 %v3008_v27, %v373_v1 }
  0xae   : > { %v368_v30 = vpop.permute.xlu1 %367  ;;  %v719_v36 = vpop.permute.xlu0 %718  ;;  %v997_v37 = vmax.f32 %v869_v17, 0.0  ;;  %v541_v3 = vmul.f32 %v3010_v28, %v373_v1  ;;  %v3114_v4 = vmul.f32 %v3010_v28, %v2994_v21  ;;  %v3118_v6 = vmul.f32 %v3004_v25, %v2996_v22  ;;  %v1147_v21 = vld [vmem:[%s3810_s5 + $0x80] sm:$0xff] }
  0xaf   : > { %1230 = vperm.xlu1 %2601, %v1144_v15   ;;  %1225 = vperm.xlu0 %2600, %v1143_v16   ;;  %v864_v47 = vadd.f32 %v719_v36, %v544_v18  ;;  %v866_v48 = vadd.f32 %v719_v36, %v546_v19  ;;  %v863_v52 = vadd.f32 %v719_v36, %v543_v29  ;;  %v1148_v15 = vld [vmem:[%s3810_s5 + $0x88] sm:$0xff] }
  0xb0   : > { %1325 = vmatprep.subr.mxu0 %v996_v20  ;;  %1582 = vmatprep.subr.mxu1 %v998_v23  ;;  %v865_v54 = vadd.f32 %v719_v36, %v545_v42  ;;  %v536_v16 = vmul.f32 %v3004_v25, %v368_v30  ;;  %v538_v17 = vmul.f32 %v3006_v26, %v368_v30 }
  0xb1   : > { %1326 = vmatpush1.msra.mxu0 %v995_v24  ;;  %1583 = vmatpush1.msra.mxu1 %v997_v37  ;;  %v992_v57 = vmax.f32 %v864_v47, 0.0  ;;  %v994_v58 = vmax.f32 %v866_v48, 0.0  ;;  %v991_v59 = vmax.f32 %v863_v52, 0.0  ;;  %v535_v23 = vmul.f32 %v3008_v27, %v368_v30 }
  0xb2   : > { %v363_v62 = vpop.permute.xlu1 %362  ;;  %v714_v63 = vpop.permute.xlu0 %713  ;;  %v993_v0 = vmax.f32 %v865_v54, 0.0  ;;  %v537_v37 = vmul.f32 %v3010_v28, %v368_v30  ;;  %v3132_v42 = vmul.f32 %v3006_v26, %v2996_v22  ;;  %v3136_v47 = vmul.f32 %v3008_v27, %v2996_v22  ;;  %v1149_v30 = vld [vmem:[%s3810_s5 + $0x90] sm:$0xff] }
  0xb3   : > { %1240 = vperm.xlu1 %2601, %v1146_v53   ;;  %1235 = vperm.xlu0 %2600, %v1145_v46   ;;  %v860_v10 = vadd.f32 %v714_v63, %v540_v55  ;;  %v862_v12 = vadd.f32 %v714_v63, %v542_v56  ;;  %v859_v14 = vadd.f32 %v714_v63, %v539_v61  ;;  %v1150_v46 = vld [vmem:[%s3810_s5 + $0x98] sm:$0xff] }
  0xb4   : > { %1327 = vmatprep.subr.mxu0 %v992_v57  ;;  %1584 = vmatprep.subr.mxu1 %v994_v58  ;;  %v861_v1 = vadd.f32 %v714_v63, %v541_v3  ;;  %v532_v55 = vmul.f32 %v3004_v25, %v363_v62  ;;  %v534_v56 = vmul.f32 %v3006_v26, %v363_v62 }
  0xb5   : > { %1328 = vmatpush1.msra.mxu0 %v991_v59  ;;  %1585 = vmatpush1.msra.mxu1 %v993_v0  ;;  %v988_v18 = vmax.f32 %v860_v10, 0.0  ;;  %v990_v19 = vmax.f32 %v862_v12, 0.0  ;;  %v987_v20 = vmax.f32 %v859_v14, 0.0  ;;  %v531_v61 = vmul.f32 %v3008_v27, %v363_v62 }
  0xb6   : > { %v358_v24 = vpop.permute.xlu1 %357  ;;  %v709_v29 = vpop.permute.xlu0 %708  ;;  %v989_v36 = vmax.f32 %v861_v1, 0.0  ;;  %v533_v10 = vmul.f32 %v3010_v28, %v363_v62 }
  0xb7   : > { %1250 = vperm.xlu1 %2601, %v1148_v15   ;;  %1245 = vperm.xlu0 %2600, %v1147_v21   ;;  %v856_v48 = vadd.f32 %v709_v29, %v536_v16  ;;  %v858_v52 = vadd.f32 %v709_v29, %v538_v17  ;;  %v855_v53 = vadd.f32 %v709_v29, %v535_v23  ;;  %v1152_v16 = vld [vmem:[%s3810_s5 + $0xa8] sm:$0xff]  ;;  %v1151_v17 = vld [vmem:[%s3810_s5 + $0xa0] sm:$0xff] }
  0xb8   : > { %1329 = vmatprep.subr.mxu0 %v988_v18  ;;  %1586 = vmatprep.subr.mxu1 %v990_v19  ;;  %v857_v54 = vadd.f32 %v709_v29, %v537_v37  ;;  %v528_v12 = vmul.f32 %v3004_v25, %v358_v24  ;;  %v530_v14 = vmul.f32 %v3006_v26, %v358_v24 }
  0xb9   : > { %1330 = vmatpush1.msra.mxu0 %v987_v20  ;;  %1587 = vmatpush1.msra.mxu1 %v989_v36  ;;  %v984_v57 = vmax.f32 %v856_v48, 0.0  ;;  %v986_v58 = vmax.f32 %v858_v52, 0.0  ;;  %v983_v59 = vmax.f32 %v855_v53, 0.0  ;;  %v527_v18 = vmul.f32 %v3008_v27, %v358_v24 }
  0xba   : > { %v353_v63 = vpop.permute.xlu1 %352  ;;  %v704_v0 = vpop.permute.xlu0 %703  ;;  %v985_v3 = vmax.f32 %v857_v54, 0.0  ;;  %v529_v19 = vmul.f32 %v3010_v28, %v358_v24 }
  0xbb   : > { %1260 = vperm.xlu1 %2601, %v1150_v46   ;;  %1255 = vperm.xlu0 %2600, %v1149_v30   ;;  %v852_v15 = vadd.f32 %v704_v0, %v532_v55  ;;  %v854_v21 = vadd.f32 %v704_v0, %v534_v56  ;;  %v851_v1 = vadd.f32 %v704_v0, %v531_v61  ;;  %v1154_v56 = vld [vmem:[%s3810_s5 + $0xb8] sm:$0xff] }
  0xbc   : > { %1331 = vmatprep.subr.mxu0 %v984_v57  ;;  %1588 = vmatprep.subr.mxu1 %v986_v58  ;;  %v853_v62 = vadd.f32 %v704_v0, %v533_v10  ;;  %v524_v36 = vmul.f32 %v3004_v25, %v353_v63  ;;  %v526_v53 = vmul.f32 %v3006_v26, %v353_v63  ;;  %v1153_v57 = vld [vmem:[%s3810_s5 + $0xb0] sm:$0xff] }
  0xbd   : > { %1332 = vmatpush1.msra.mxu0 %v983_v59  ;;  %1589 = vmatpush1.msra.mxu1 %v985_v3  ;;  %v980_v20 = vmax.f32 %v852_v15, 0.0  ;;  %v982_v23 = vmax.f32 %v854_v21, 0.0  ;;  %v979_v29 = vmax.f32 %v851_v1, 0.0  ;;  %v523_v46 = vmul.f32 %v3008_v27, %v353_v63 }
  0xbe   : > { %v694_v37 = vpop.permute.xlu1 %693  ;;  %v699_v48 = vpop.permute.xlu0 %698  ;;  %v981_v52 = vmax.f32 %v853_v62, 0.0  ;;  %v525_v30 = vmul.f32 %v3010_v28, %v353_v63 }
  0xbf   : > { %1270 = vperm.xlu1 %2601, %v1152_v16   ;;  %1265 = vperm.xlu0 %2600, %v1151_v17   ;;  %v848_v54 = vadd.f32 %v699_v48, %v528_v12  ;;  %v850_v24 = vadd.f32 %v699_v48, %v530_v14  ;;  %v847_v55 = vadd.f32 %v699_v48, %v527_v18 }
  0xc0   : > { %1333 = vmatprep.subr.mxu0 %v980_v20  ;;  %1590 = vmatprep.subr.mxu1 %v982_v23  ;;  %v849_v58 = vadd.f32 %v699_v48, %v529_v19  ;;  %v844_v59 = vadd.f32 %v694_v37, %v524_v36  ;;  %v846_v61 = vadd.f32 %v694_v37, %v526_v53 }
  0xc1   : > { %1334 = vmatpush1.msra.mxu0 %v979_v29  ;;  %1591 = vmatpush1.msra.mxu1 %v981_v52  ;;  %v976_v63 = vmax.f32 %v848_v54, 0.0  ;;  %v978_v0 = vmax.f32 %v850_v24, 0.0  ;;  %v975_v3 = vmax.f32 %v847_v55, 0.0  ;;  %v843_v10 = vadd.f32 %v694_v37, %v523_v46 }
  0xc2   : > { %v684_v12 = vpop.permute.xlu1 %683  ;;  %v689_v14 = vpop.permute.xlu0 %688  ;;  %v977_v15 = vmax.f32 %v849_v58, 0.0  ;;  %v972_v21 = vmax.f32 %v844_v59, 0.0  ;;  %v845_v1 = vadd.f32 %v694_v37, %v525_v30  ;;  %v517_v16 = vmul.f32 %v3010_v28, %v2996_v22 }
  0xc3   : > { %1280 = vperm.xlu1 %2601, %v1154_v56   ;;  %1275 = vperm.xlu0 %2600, %v1153_v57   ;;  %v974_v17 = vmax.f32 %v846_v61, 0.0  ;;  %v840_v62 = vadd.f32 %v689_v14, %v3078_v8  ;;  %v842_v18 = vadd.f32 %v689_v14, %v3096_v43  ;;  %v839_v19 = vadd.f32 %v689_v14, %v3100_v44  ;;  %v1156_v8 = vld [vmem:[%s3810_s5 + $0xc8] sm:$0xff]  ;;  %v1155_v43 = vld [vmem:[%s3810_s5 + $0xc0] sm:$0xff] }
  0xc4   : > { %1335 = vmatprep.subr.mxu0 %v976_v63  ;;  %1592 = vmatprep.subr.mxu1 %v978_v0  ;;  %v971_v20 = vmax.f32 %v843_v10, 0.0  ;;  %v841_v23 = vadd.f32 %v689_v14, %v3114_v4  ;;  %v836_v29 = vadd.f32 %v684_v12, %v3118_v6  ;;  %v838_v36 = vadd.f32 %v684_v12, %v3132_v42  ;;  %v1965_v63 = vld [vmem:[%s3811_s6] sm:$0xff] }
  0xc5   : > { %1336 = vmatpush1.msra.mxu0 %v975_v3  ;;  %1593 = vmatpush1.msra.mxu1 %v977_v15  ;;  %v973_v22 = vmax.f32 %v845_v1, 0.0  ;;  %v968_v44 = vmax.f32 %v840_v62, 0.0  ;;  %v970_v37 = vmax.f32 %v842_v18, 0.0  ;;  %v835_v48 = vadd.f32 %v684_v12, %v3136_v47 }
  0xc6   : > { %1337 = vmatprep.subr.mxu0 %v972_v21  ;;  %1594 = vmatprep.subr.mxu1 %v974_v17  ;;  %v674_v4 = vpop.permute.xlu1 %673  ;;  %v679_v6 = vpop.permute.xlu0 %678  ;;  %v967_v42 = vmax.f32 %v839_v19, 0.0  ;;  %v969_v52 = vmax.f32 %v841_v23, 0.0  ;;  %v837_v53 = vadd.f32 %v684_v12, %v517_v16  ;;  %v507_v46 = vmul.f32 %v3008_v27, %v2979_v13  ;;  %v1967_v23 = vld [vmem:[%s3811_s6 + $0x10] sm:$0xff] }
  0xc7   : > { %1338 = vmatpush1.msra.mxu0 %v971_v20  ;;  %1595 = vmatpush1.msra.mxu1 %v973_v22  ;;  %v832_v30 = vadd.f32 %v679_v6, %v3050_v45  ;;  %v834_v54 = vadd.f32 %v679_v6, %v3054_v49  ;;  %v831_v24 = vadd.f32 %v679_v6, %v3057_v50  ;;  %v964_v47 = vmax.f32 %v836_v29, 0.0 }
  0xc8   : > { %1290 = vperm.xlu1 %2601, %v1156_v8   ;;  %1285 = vperm.xlu0 %2600, %v1155_v43   ;;  %v966_v55 = vmax.f32 %v838_v36, 0.0  ;;  %v833_v56 = vadd.f32 %v679_v6, %v3060_v51  ;;  %v509_v57 = vmul.f32 %v3010_v28, %v2979_v13  ;;  %v963_v58 = vmax.f32 %v835_v48, 0.0  ;;  %v1157_v13 = vld [vmem:[%s3810_s5 + $0xd0] sm:$0xff] }
  0xc9   : > { %1339 = vmatprep.subr.mxu0 %v968_v44  ;;  %1596 = vmatprep.subr.mxu1 %v970_v37  ;;  %v965_v59 = vmax.f32 %v837_v53, 0.0  ;;  %v828_v61 = vadd.f32 %v674_v4, %v3072_v60  ;;  %v830_v45 = vadd.f32 %v674_v4, %v3082_v9  ;;  %v960_v51 = vmax.f32 %v832_v30, 0.0 }
  0xca   : > { %1340 = vmatpush1.msra.mxu0 %v967_v42  ;;  %1597 = vmatpush1.msra.mxu1 %v969_v52  ;;  %v664_v49 = vpop.permute.xlu1 %663  ;;  %v669_v50 = vpop.permute.xlu0 %668  ;;  %v962_v0 = vmax.f32 %v834_v54, 0.0  ;;  %v827_v3 = vadd.f32 %v674_v4, %v507_v46  ;;  %v829_v10 = vadd.f32 %v674_v4, %v509_v57  ;;  %v959_v60 = vmax.f32 %v831_v24, 0.0  ;;  %v1969_v54 = vld [vmem:[%s3811_s6 + $0x20] sm:$0xff]  ;;  %v1968_v24 = vld [vmem:[%s3811_s6 + $0x18] sm:$0xff] }
  0xcb   : > { %1341 = vmatprep.subr.mxu0 %v964_v47  ;;  %1598 = vmatprep.subr.mxu1 %v966_v55  ;;  %v961_v9 = vmax.f32 %v833_v56, 0.0  ;;  %v824_v12 = vadd.f32 %v669_v50, %v3019_v33  ;;  %v826_v14 = vadd.f32 %v669_v50, %v3034_v38  ;;  %v823_v15 = vadd.f32 %v669_v50, %v3037_v39 }
  0xcc   : > { %1342 = vmatpush1.msra.mxu0 %v963_v58  ;;  %1599 = vmatpush1.msra.mxu1 %v965_v59  ;;  %v825_v21 = vadd.f32 %v669_v50, %v3040_v40  ;;  %v498_v1 = vmul.f32 %v3006_v26, %v2965_v7  ;;  %v956_v16 = vmax.f32 %v828_v61, 0.0  ;;  %v958_v17 = vmax.f32 %v830_v45, 0.0 }
  0xcd   : > { %1999 = vperm.xlu1 %2601, %v1965_v63   ;;  %1295 = vperm.xlu0 %2600, %v1157_v13   ;;  %v495_v62 = vmul.f32 %v3008_v27, %v2965_v7  ;;  %v497_v33 = vmul.f32 %v3010_v28, %v2965_v7  ;;  %v955_v39 = vmax.f32 %v827_v3, 0.0  ;;  %v957_v19 = vmax.f32 %v829_v10, 0.0  ;;  %v1966_v7 = vld [vmem:[%s3811_s6 + $0x8] sm:$0xff]  ;;  %v1971_v10 = vld [vmem:[%s3811_s6 + $0x30] sm:$0xff] }
  0xce   : > { %1343 = vmatprep.subr.mxu0 %v960_v51  ;;  %1600 = vmatprep.subr.mxu1 %v962_v0  ;;  %v468_v38 = vpop.permute.xlu1 %467  ;;  %v659_v18 = vpop.permute.xlu0 %658  ;;  %v820_v40 = vadd.f32 %v664_v49, %v3013_v31  ;;  %v822_v20 = vadd.f32 %v664_v49, %v3016_v32  ;;  %v952_v29 = vmax.f32 %v824_v12, 0.0  ;;  %v954_v36 = vmax.f32 %v826_v14, 0.0 }
  0xcf   : > { %1344 = vmatpush1.msra.mxu0 %v959_v60  ;;  %1601 = vmatpush1.msra.mxu1 %v961_v9  ;;  %v819_v22 = vadd.f32 %v664_v49, %v3022_v34  ;;  %v821_v8 = vadd.f32 %v664_v49, %v3025_v35  ;;  %v951_v31 = vmax.f32 %v823_v15, 0.0  ;;  %v953_v32 = vmax.f32 %v825_v21, 0.0  ;;  %v1970_v60 = vld [vmem:[%s3811_s6 + $0x28] sm:$0xff] }
  0xd0   : > { %1345 = vmatprep.subr.mxu0 %v956_v16  ;;  %1602 = vmatprep.subr.mxu1 %v958_v17  ;;  %v816_v43 = vadd.f32 %v659_v18, %v3044_v41  ;;  %v818_v44 = vadd.f32 %v659_v18, %v498_v1  ;;  %v815_v37 = vadd.f32 %v659_v18, %v495_v62  ;;  %v948_v52 = vmax.f32 %v820_v40, 0.0 }
  0xd1   : > { %1346 = vmatpush1.msra.mxu0 %v955_v39  ;;  %1603 = vmatpush1.msra.mxu1 %v957_v19  ;;  %v817_v48 = vadd.f32 %v659_v18, %v497_v33  ;;  %v492_v4 = vmul.f32 %v3004_v25, %v2956_v2  ;;  %v494_v35 = vmul.f32 %v3006_v26, %v2956_v2  ;;  %v950_v53 = vmax.f32 %v822_v20, 0.0  ;;  %v1973_v20 = vld [vmem:[%s3811_s6 + $0x40] sm:$0xff] }
  0xd2   : > { %2009 = vperm.xlu1 %2601, %v1967_v23   ;;  %2004 = vperm.xlu0 %2600, %v1966_v7   ;;  %v463_v6 = vpop.permute.xlu1 %462  ;;  %v654_v34 = vpop.permute.xlu0 %653  ;;  %v491_v42 = vmul.f32 %v3008_v27, %v2956_v2  ;;  %v493_v41 = vmul.f32 %v3010_v28, %v2956_v2  ;;  %v947_v46 = vmax.f32 %v819_v22, 0.0  ;;  %v949_v30 = vmax.f32 %v821_v8, 0.0  ;;  %v1972_v23 = vld [vmem:[%s3811_s6 + $0x38] sm:$0xff] }
  0xd3   : > { %1347 = vmatprep.subr.mxu0 %v952_v29  ;;  %1604 = vmatprep.subr.mxu1 %v954_v36  ;;  %v944_v47 = vmax.f32 %v816_v43, 0.0  ;;  %v946_v55 = vmax.f32 %v818_v44, 0.0  ;;  %v812_v56 = vadd.f32 %v654_v34, %v492_v4  ;;  %v814_v2 = vadd.f32 %v654_v34, %v494_v35  ;;  %v1975_v35 = vld [vmem:[%s3811_s6 + $0x50] sm:$0xff] }
  0xd4   : > { %1348 = vmatpush1.msra.mxu0 %v951_v31  ;;  %1605 = vmatpush1.msra.mxu1 %v953_v32  ;;  %v943_v57 = vmax.f32 %v815_v37, 0.0  ;;  %v945_v58 = vmax.f32 %v817_v48, 0.0  ;;  %v811_v59 = vadd.f32 %v654_v34, %v491_v42  ;;  %v813_v61 = vadd.f32 %v654_v34, %v493_v41  ;;  %v1974_v42 = vld [vmem:[%s3811_s6 + $0x48] sm:$0xff] }
  0xd5   : > { %1349 = vmatprep.subr.mxu0 %v948_v52  ;;  %1606 = vmatprep.subr.mxu1 %v950_v53  ;;  %v616_v45 = vmul.f32 %v3004_v25, %v468_v38  ;;  %v618_v49 = vmul.f32 %v3006_v26, %v468_v38  ;;  %v940_v13 = vmax.f32 %v812_v56, 0.0  ;;  %v942_v51 = vmax.f32 %v814_v2, 0.0 }
  0xd6   : > { %1350 = vmatpush1.msra.mxu0 %v947_v46  ;;  %1607 = vmatpush1.msra.mxu1 %v949_v30  ;;  %v458_v50 = vpop.permute.xlu1 %457  ;;  %v809_v63 = vpop.permute.xlu0 %808  ;;  %v615_v0 = vmul.f32 %v3008_v27, %v468_v38  ;;  %v617_v3 = vmul.f32 %v3010_v28, %v468_v38  ;;  %v939_v9 = vmax.f32 %v811_v59, 0.0  ;;  %v941_v12 = vmax.f32 %v813_v61, 0.0  ;;  %v1977_v61 = vld [vmem:[%s3811_s6 + $0x60] sm:$0xff] }
  0xd7   : > { %2019 = vperm.xlu1 %2601, %v1969_v54   ;;  %2014 = vperm.xlu0 %2600, %v1968_v24   ;;  %v936_v14 = vadd.f32 %v809_v63, %v616_v45  ;;  %v938_v15 = vadd.f32 %v809_v63, %v618_v49  ;;  %v612_v16 = vmul.f32 %v3004_v25, %v463_v6  ;;  %v1976_v45 = vld [vmem:[%s3811_s6 + $0x58] sm:$0xff] }
  0xd8   : > { %1351 = vmatprep.subr.mxu0 %v944_v47  ;;  %1608 = vmatprep.subr.mxu1 %v946_v55  ;;  %v935_v21 = vadd.f32 %v809_v63, %v615_v0  ;;  %v937_v1 = vadd.f32 %v809_v63, %v617_v3  ;;  %v614_v17 = vmul.f32 %v3006_v26, %v463_v6 }
  0xd9   : > { %1352 = vmatpush1.msra.mxu0 %v943_v57  ;;  %1609 = vmatpush1.msra.mxu1 %v945_v58  ;;  %v1064_v38 = vmax.f32 %v936_v14, 0.0  ;;  %v1066_v18 = vmax.f32 %v938_v15, 0.0  ;;  %v611_v39 = vmul.f32 %v3008_v27, %v463_v6  ;;  %v613_v19 = vmul.f32 %v3010_v28, %v463_v6 }
  0xda   : > { %1353 = vmatprep.subr.mxu0 %v940_v13  ;;  %1610 = vmatprep.subr.mxu1 %v942_v51  ;;  %v453_v62 = vpop.permute.xlu1 %452  ;;  %v804_v33 = vpop.permute.xlu0 %803  ;;  %v1063_v40 = vmax.f32 %v935_v21, 0.0  ;;  %v1065_v7 = vmax.f32 %v937_v1, 0.0  ;;  %v608_v31 = vmul.f32 %v3004_v25, %v458_v50  ;;  %v610_v32 = vmul.f32 %v3006_v26, %v458_v50  ;;  %v1979_v1 = vld [vmem:[%s3811_s6 + $0x70] sm:$0xff] }
  0xdb   : > { %2029 = vperm.xlu1 %2601, %v1971_v10   ;;  %2024 = vperm.xlu0 %2600, %v1970_v60   ;;  %v932_v29 = vadd.f32 %v804_v33, %v612_v16  ;;  %v934_v36 = vadd.f32 %v804_v33, %v614_v17  ;;  %v931_v22 = vadd.f32 %v804_v33, %v611_v39  ;;  %v1978_v16 = vld [vmem:[%s3811_s6 + $0x68] sm:$0xff] }
  0xdc   : > { %1354 = vmatpush1.msra.mxu0 %v939_v9  ;;  %1611 = vmatpush1.msra.mxu1 %v941_v12  ;;  %v933_v8 = vadd.f32 %v804_v33, %v613_v19  ;;  %v607_v4 = vmul.f32 %v3008_v27, %v458_v50  ;;  %v609_v6 = vmul.f32 %v3010_v28, %v458_v50 }
  0xdd   : > { %1355 = vmatprep.subr.mxu0 %v1064_v38  ;;  %1612 = vmatprep.subr.mxu1 %v1066_v18  ;;  %v1060_v37 = vmax.f32 %v932_v29, 0.0  ;;  %v1062_v48 = vmax.f32 %v934_v36, 0.0  ;;  %v1059_v34 = vmax.f32 %v931_v22, 0.0  ;;  %v604_v54 = vmul.f32 %v3004_v25, %v453_v62 }
  0xde   : > { %1356 = vmatpush2.msra.mxu0 %v1063_v40  ;;  %1613 = vmatpush2.msra.mxu1 %v1065_v7  ;;  %v448_v43 = vpop.permute.xlu1 %447  ;;  %v799_v44 = vpop.permute.xlu0 %798  ;;  %v1061_v41 = vmax.f32 %v933_v8, 0.0  ;;  %v606_v24 = vmul.f32 %v3006_v26, %v453_v62  ;;  %v603_v57 = vmul.f32 %v3008_v27, %v453_v62  ;;  %v605_v58 = vmul.f32 %v3010_v28, %v453_v62  ;;  %v1981_v8 = vld [vmem:[%s3811_s6 + $0x80] sm:$0xff] }
  0xdf   : > { %2039 = vperm.xlu1 %2601, %v1973_v20   ;;  %2034 = vperm.xlu0 %2600, %v1972_v23   ;;  %v928_v52 = vadd.f32 %v799_v44, %v608_v31  ;;  %v930_v53 = vadd.f32 %v799_v44, %v610_v32  ;;  %v927_v46 = vadd.f32 %v799_v44, %v607_v4  ;;  %v1980_v31 = vld [vmem:[%s3811_s6 + $0x78] sm:$0xff] }
  0xe0   : > { %1357 = vmatprep.subr.mxu0 %v1060_v37  ;;  %1614 = vmatprep.subr.mxu1 %v1062_v48  ;;  %v929_v30 = vadd.f32 %v799_v44, %v609_v6  ;;  %v600_v0 = vmul.f32 %v3004_v25, %v448_v43  ;;  %v602_v3 = vmul.f32 %v3006_v26, %v448_v43 }
  0xe1   : > { %1358 = vmatpush2.msra.mxu0 %v1059_v34  ;;  %1615 = vmatpush2.msra.mxu1 %v1061_v41  ;;  %v1056_v56 = vmax.f32 %v928_v52, 0.0  ;;  %v1058_v2 = vmax.f32 %v930_v53, 0.0  ;;  %v1055_v59 = vmax.f32 %v927_v46, 0.0  ;;  %v599_v14 = vmul.f32 %v3008_v27, %v448_v43 }
  0xe2   : > { %v443_v47 = vpop.permute.xlu1 %442  ;;  %v794_v55 = vpop.permute.xlu0 %793  ;;  %v1057_v49 = vmax.f32 %v929_v30, 0.0  ;;  %v601_v15 = vmul.f32 %v3010_v28, %v448_v43  ;;  %v1983_v30 = vld [vmem:[%s3811_s6 + $0x90] sm:$0xff] }
  0xe3   : > { %2049 = vperm.xlu1 %2601, %v1975_v35   ;;  %2044 = vperm.xlu0 %2600, %v1974_v42   ;;  %v924_v50 = vadd.f32 %v794_v55, %v604_v54  ;;  %v926_v63 = vadd.f32 %v794_v55, %v606_v24  ;;  %v923_v13 = vadd.f32 %v794_v55, %v603_v57  ;;  %v1982_v54 = vld [vmem:[%s3811_s6 + $0x88] sm:$0xff] }
  0xe4   : > { %1359 = vmatprep.subr.mxu0 %v1056_v56  ;;  %1616 = vmatprep.subr.mxu1 %v1058_v2  ;;  %v925_v51 = vadd.f32 %v794_v55, %v605_v58  ;;  %v596_v39 = vmul.f32 %v3004_v25, %v443_v47  ;;  %v598_v19 = vmul.f32 %v3006_v26, %v443_v47 }
  0xe5   : > { %1360 = vmatpush2.msra.mxu0 %v1055_v59  ;;  %1617 = vmatpush2.msra.mxu1 %v1057_v49  ;;  %v1052_v9 = vmax.f32 %v924_v50, 0.0  ;;  %v1054_v12 = vmax.f32 %v926_v63, 0.0  ;;  %v1051_v21 = vmax.f32 %v923_v13, 0.0  ;;  %v595_v29 = vmul.f32 %v3008_v27, %v443_v47 }
  0xe6   : > { %v438_v10 = vpop.permute.xlu1 %437  ;;  %v789_v60 = vpop.permute.xlu0 %788  ;;  %v1053_v17 = vmax.f32 %v925_v51, 0.0  ;;  %v597_v36 = vmul.f32 %v3010_v28, %v443_v47  ;;  %v1985_v51 = vld [vmem:[%s3811_s6 + $0xa0] sm:$0xff] }
  0xe7   : > { %2059 = vperm.xlu1 %2601, %v1977_v61   ;;  %2054 = vperm.xlu0 %2600, %v1976_v45   ;;  %v920_v62 = vadd.f32 %v789_v60, %v600_v0  ;;  %v922_v33 = vadd.f32 %v789_v60, %v602_v3  ;;  %v919_v38 = vadd.f32 %v789_v60, %v599_v14  ;;  %v1984_v0 = vld [vmem:[%s3811_s6 + $0x98] sm:$0xff] }
  0xe8   : > { %1361 = vmatprep.subr.mxu0 %v1052_v9  ;;  %1618 = vmatprep.subr.mxu1 %v1054_v12  ;;  %v921_v18 = vadd.f32 %v789_v60, %v601_v15  ;;  %v592_v4 = vmul.f32 %v3004_v25, %v438_v10  ;;  %v594_v6 = vmul.f32 %v3006_v26, %v438_v10 }
  0xe9   : > { %1362 = vmatpush2.msra.mxu0 %v1051_v21  ;;  %1619 = vmatpush2.msra.mxu1 %v1053_v17  ;;  %v1048_v23 = vmax.f32 %v920_v62, 0.0  ;;  %v1050_v7 = vmax.f32 %v922_v33, 0.0  ;;  %v1047_v22 = vmax.f32 %v919_v38, 0.0  ;;  %v591_v52 = vmul.f32 %v3008_v27, %v438_v10 }
  0xea   : > { %v433_v40 = vpop.permute.xlu1 %432  ;;  %v784_v20 = vpop.permute.xlu0 %783  ;;  %v1049_v32 = vmax.f32 %v921_v18, 0.0  ;;  %v593_v53 = vmul.f32 %v3010_v28, %v438_v10  ;;  %v1987_v18 = vld [vmem:[%s3811_s6 + $0xb0] sm:$0xff] }
  0xeb   : > { %2069 = vperm.xlu1 %2601, %v1979_v1   ;;  %2064 = vperm.xlu0 %2600, %v1978_v16   ;;  %v916_v43 = vadd.f32 %v784_v20, %v596_v39  ;;  %v918_v44 = vadd.f32 %v784_v20, %v598_v19  ;;  %v915_v37 = vadd.f32 %v784_v20, %v595_v29  ;;  %v1986_v39 = vld [vmem:[%s3811_s6 + $0xa8] sm:$0xff] }
  0xec   : > { %1363 = vmatprep.subr.mxu0 %v1048_v23  ;;  %1620 = vmatprep.subr.mxu1 %v1050_v7  ;;  %v917_v48 = vadd.f32 %v784_v20, %v597_v36  ;;  %v588_v57 = vmul.f32 %v3004_v25, %v433_v40  ;;  %v590_v58 = vmul.f32 %v3006_v26, %v433_v40 }
  0xed   : > { %1364 = vmatpush2.msra.mxu0 %v1047_v22  ;;  %1621 = vmatpush2.msra.mxu1 %v1049_v32  ;;  %v1044_v42 = vmax.f32 %v916_v43, 0.0  ;;  %v1046_v41 = vmax.f32 %v918_v44, 0.0  ;;  %v1043_v46 = vmax.f32 %v915_v37, 0.0  ;;  %v587_v50 = vmul.f32 %v3008_v27, %v433_v40 }
  0xee   : > { %v428_v34 = vpop.permute.xlu1 %427  ;;  %v779_v35 = vpop.permute.xlu0 %778  ;;  %v1045_v24 = vmax.f32 %v917_v48, 0.0  ;;  %v589_v63 = vmul.f32 %v3010_v28, %v433_v40  ;;  %v1989_v48 = vld [vmem:[%s3811_s6 + $0xc0] sm:$0xff] }
  0xef   : > { %2079 = vperm.xlu1 %2601, %v1981_v8   ;;  %2074 = vperm.xlu0 %2600, %v1980_v31   ;;  %v912_v47 = vadd.f32 %v779_v35, %v592_v4  ;;  %v914_v55 = vadd.f32 %v779_v35, %v594_v6  ;;  %v911_v56 = vadd.f32 %v779_v35, %v591_v52  ;;  %v1988_v4 = vld [vmem:[%s3811_s6 + $0xb8] sm:$0xff] }
  0xf0   : > { %1365 = vmatprep.subr.mxu0 %v1044_v42  ;;  %1622 = vmatprep.subr.mxu1 %v1046_v41  ;;  %v913_v2 = vadd.f32 %v779_v35, %v593_v53  ;;  %v584_v14 = vmul.f32 %v3004_v25, %v428_v34  ;;  %v586_v15 = vmul.f32 %v3006_v26, %v428_v34 }
  0xf1   : > { %1366 = vmatpush2.msra.mxu0 %v1043_v46  ;;  %1623 = vmatpush2.msra.mxu1 %v1045_v24  ;;  %v1040_v45 = vmax.f32 %v912_v47, 0.0  ;;  %v1042_v49 = vmax.f32 %v914_v55, 0.0  ;;  %v1039_v13 = vmax.f32 %v911_v56, 0.0  ;;  %v583_v62 = vmul.f32 %v3008_v27, %v428_v34 }
  0xf2   : > { %v423_v59 = vpop.permute.xlu1 %422  ;;  %v774_v61 = vpop.permute.xlu0 %773  ;;  %v1041_v3 = vmax.f32 %v913_v2, 0.0  ;;  %v585_v33 = vmul.f32 %v3010_v28, %v428_v34  ;;  %v1990_v2 = vld [vmem:[%s3811_s6 + $0xc8] sm:$0xff] }
  0xf3   : > { %2089 = vperm.xlu1 %2601, %v1983_v30   ;;  %2084 = vperm.xlu0 %2600, %v1982_v54   ;;  %v908_v10 = vadd.f32 %v774_v61, %v588_v57  ;;  %v910_v60 = vadd.f32 %v774_v61, %v590_v58  ;;  %v907_v9 = vadd.f32 %v774_v61, %v587_v50  ;;  %v1158_v57 = vld [vmem:[%s3810_s5 + $0xd8] sm:$0xff] }
  0xf4   : > { %1367 = vmatprep.subr.mxu0 %v1040_v45  ;;  %1624 = vmatprep.subr.mxu1 %v1042_v49  ;;  %v909_v12 = vadd.f32 %v774_v61, %v589_v63  ;;  %v580_v29 = vmul.f32 %v3004_v25, %v423_v59  ;;  %v582_v36 = vmul.f32 %v3006_v26, %v423_v59 }
  0xf5   : > { %1368 = vmatpush2.msra.mxu0 %v1039_v13  ;;  %1625 = vmatpush2.msra.mxu1 %v1041_v3  ;;  %v1036_v16 = vmax.f32 %v908_v10, 0.0  ;;  %v1038_v17 = vmax.f32 %v910_v60, 0.0  ;;  %v1035_v38 = vmax.f32 %v907_v9, 0.0  ;;  %v579_v43 = vmul.f32 %v3008_v27, %v423_v59 }
  0xf6   : > { %v418_v21 = vpop.permute.xlu1 %417  ;;  %v769_v1 = vpop.permute.xlu0 %768  ;;  %v1037_v19 = vmax.f32 %v909_v12, 0.0  ;;  %v581_v44 = vmul.f32 %v3010_v28, %v423_v59  ;;  %v1991_v12 = vld [vmem:[%s3811_s6 + $0xd0] sm:$0xff] }
  0xf7   : > { %2099 = vperm.xlu1 %2601, %v1985_v51   ;;  %2094 = vperm.xlu0 %2600, %v1984_v0   ;;  %v904_v40 = vadd.f32 %v769_v1, %v584_v14  ;;  %v906_v20 = vadd.f32 %v769_v1, %v586_v15  ;;  %v903_v23 = vadd.f32 %v769_v1, %v583_v62  ;;  %v1159_v14 = vld [vmem:[%s3810_s5 + $0xe0] sm:$0xff] }
  0xf8   : > { %1369 = vmatprep.subr.mxu0 %v1036_v16  ;;  %1626 = vmatprep.subr.mxu1 %v1038_v17  ;;  %v905_v7 = vadd.f32 %v769_v1, %v585_v33  ;;  %v576_v52 = vmul.f32 %v3004_v25, %v418_v21  ;;  %v578_v53 = vmul.f32 %v3006_v26, %v418_v21 }
  0xf9   : > { %1370 = vmatpush2.msra.mxu0 %v1035_v38  ;;  %1627 = vmatpush2.msra.mxu1 %v1037_v19  ;;  %v1032_v31 = vmax.f32 %v904_v40, 0.0  ;;  %v1034_v32 = vmax.f32 %v906_v20, 0.0  ;;  %v1031_v37 = vmax.f32 %v903_v23, 0.0  ;;  %v575_v47 = vmul.f32 %v3008_v27, %v418_v21 }
  0xfa   : > { %v413_v22 = vpop.permute.xlu1 %412  ;;  %v764_v8 = vpop.permute.xlu0 %763  ;;  %v1033_v6 = vmax.f32 %v905_v7, 0.0  ;;  %v577_v55 = vmul.f32 %v3010_v28, %v418_v21  ;;  %v1992_v7 = vld [vmem:[%s3811_s6 + $0xd8] sm:$0xff] }
  0xfb   : > { %2109 = vperm.xlu1 %2601, %v1987_v18   ;;  %2104 = vperm.xlu0 %2600, %v1986_v39   ;;  %v900_v34 = vadd.f32 %v764_v8, %v580_v29  ;;  %v902_v35 = vadd.f32 %v764_v8, %v582_v36  ;;  %v899_v42 = vadd.f32 %v764_v8, %v579_v43  ;;  %v1160_v29 = vld [vmem:[%s3810_s5 + $0xe8] sm:$0xff] }
  0xfc   : > { %1371 = vmatprep.subr.mxu0 %v1032_v31  ;;  %1628 = vmatprep.subr.mxu1 %v1034_v32  ;;  %v901_v41 = vadd.f32 %v764_v8, %v581_v44  ;;  %v572_v50 = vmul.f32 %v3004_v25, %v413_v22  ;;  %v574_v63 = vmul.f32 %v3006_v26, %v413_v22 }
  0xfd   : > { %1372 = vmatpush2.msra.mxu0 %v1031_v37  ;;  %1629 = vmatpush2.msra.mxu1 %v1033_v6  ;;  %v1028_v54 = vmax.f32 %v900_v34, 0.0  ;;  %v1030_v24 = vmax.f32 %v902_v35, 0.0  ;;  %v1027_v56 = vmax.f32 %v899_v42, 0.0  ;;  %v571_v10 = vmul.f32 %v3008_v27, %v413_v22 }
  0xfe   : > { %v408_v46 = vpop.permute.xlu1 %407  ;;  %v759_v30 = vpop.permute.xlu0 %758  ;;  %v1029_v58 = vmax.f32 %v901_v41, 0.0  ;;  %v573_v60 = vmul.f32 %v3010_v28, %v413_v22 }
  0xff   : > { %2119 = vperm.xlu1 %2601, %v1989_v48   ;;  %2114 = vperm.xlu0 %2600, %v1988_v4   ;;  %v896_v59 = vadd.f32 %v759_v30, %v576_v52  ;;  %v898_v61 = vadd.f32 %v759_v30, %v578_v53  ;;  %v895_v45 = vadd.f32 %v759_v30, %v575_v47 }
 0x100   : > { %1373 = vmatprep.subr.mxu0 %v1028_v54  ;;  %1630 = vmatprep.subr.mxu1 %v1030_v24  ;;  %v897_v49 = vadd.f32 %v759_v30, %v577_v55  ;;  %v568_v62 = vmul.f32 %v3004_v25, %v408_v46  ;;  %v570_v33 = vmul.f32 %v3006_v26, %v408_v46  ;;  %v1993_v30 = vld [vmem:[%s3811_s6 + $0xe0] sm:$0xff]  ;;  %v1161_v54 = vld [vmem:[%s3810_s5 + $0xf0] sm:$0xff] }
 0x101   : > { %1374 = vmatpush2.msra.mxu0 %v1027_v56  ;;  %1631 = vmatpush2.msra.mxu1 %v1029_v58  ;;  %v1024_v0 = vmax.f32 %v896_v59, 0.0  ;;  %v1026_v3 = vmax.f32 %v898_v61, 0.0  ;;  %v1023_v9 = vmax.f32 %v895_v45, 0.0  ;;  %v567_v40 = vmul.f32 %v3008_v27, %v408_v46 }
 0x102   : > { %v403_v13 = vpop.permute.xlu1 %402  ;;  %v754_v51 = vpop.permute.xlu0 %753  ;;  %v1025_v15 = vmax.f32 %v897_v49, 0.0  ;;  %v569_v20 = vmul.f32 %v3010_v28, %v408_v46 }
 0x103   : > { %2124 = vperm.xlu1 %2601, %v1990_v2   ;;  %1300 = vperm.xlu0 %2600, %v1158_v57   ;;  %v892_v21 = vadd.f32 %v754_v51, %v572_v50  ;;  %v894_v1 = vadd.f32 %v754_v51, %v574_v63  ;;  %v891_v16 = vadd.f32 %v754_v51, %v571_v10 }
 0x104   : > { %1375 = vmatprep.subr.mxu0 %v1024_v0  ;;  %1632 = vmatprep.subr.mxu1 %v1026_v3  ;;  %v893_v17 = vadd.f32 %v754_v51, %v573_v60  ;;  %v563_v31 = vmul.f32 %v3008_v27, %v403_v13  ;;  %v564_v32 = vmul.f32 %v3004_v25, %v403_v13 }
 0x105   : > { %1376 = vmatpush2.msra.mxu0 %v1023_v9  ;;  %1633 = vmatpush2.msra.mxu1 %v1025_v15  ;;  %v1020_v39 = vmax.f32 %v892_v21, 0.0  ;;  %v1022_v19 = vmax.f32 %v894_v1, 0.0  ;;  %v1019_v23 = vmax.f32 %v891_v16, 0.0  ;;  %v565_v37 = vmul.f32 %v3010_v28, %v403_v13  ;;  %v1996_v16 = vld [vmem:[%s3811_s6 + $0xf8] sm:$0xff] }
 0x106   : > { %v398_v38 = vpop.permute.xlu1 %397  ;;  %v749_v18 = vpop.permute.xlu0 %748  ;;  %v1021_v36 = vmax.f32 %v893_v17, 0.0  ;;  %v566_v48 = vmul.f32 %v3006_v26, %v403_v13  ;;  %v1995_v17 = vld [vmem:[%s3811_s6 + $0xf0] sm:$0xff] }
 0x107   : > { %2129 = vperm.xlu1 %2601, %v1991_v12   ;;  %1305 = vperm.xlu0 %2600, %v1159_v14   ;;  %v888_v22 = vadd.f32 %v749_v18, %v568_v62  ;;  %v890_v8 = vadd.f32 %v749_v18, %v570_v33  ;;  %v887_v43 = vadd.f32 %v749_v18, %v567_v40  ;;  %v1069_v40 = vld [vmem:[%s3809_s4 + $0x10] sm:$0xff] }
 0x108   : > { %1377 = vmatprep.subr.mxu0 %v1020_v39  ;;  %1634 = vmatprep.subr.mxu1 %v1022_v19  ;;  %v889_v44 = vadd.f32 %v749_v18, %v569_v20  ;;  %v559_v42 = vmul.f32 %v3008_v27, %v398_v38  ;;  %v560_v41 = vmul.f32 %v3004_v25, %v398_v38  ;;  %v1067_v39 = vld [vmem:[%s3809_s4] sm:$0xff]  ;;  %v1070_v19 = vld [vmem:[%s3809_s4 + $0x18] sm:$0xff]  ;;  %v1072_v20 = vld [vmem:[%s3809_s4 + $0x28] sm:$0xff] }
 0x109   : > { %1378 = vmatpush2.msra.mxu0 %v1019_v23  ;;  %1635 = vmatpush2.msra.mxu1 %v1021_v36  ;;  %v1016_v34 = vmax.f32 %v888_v22, 0.0  ;;  %v1018_v35 = vmax.f32 %v890_v8, 0.0  ;;  %v561_v52 = vmul.f32 %v3010_v28, %v398_v38  ;;  %v1015_v53 = vmax.f32 %v887_v43, 0.0  ;;  %v1071_v23 = vld [vmem:[%s3809_s4 + $0x20] sm:$0xff]  ;;  %v1076_v36 = vld [vmem:[%s3809_s4 + $0x48] sm:$0xff]  ;;  %v1078_v8 = vld [vmem:[%s3809_s4 + $0x58] sm:$0xff] }
 0x10a   : > { %v393_v4 = vpop.permute.xlu1 %392  ;;  %v744_v6 = vpop.permute.xlu0 %743  ;;  %v562_v46 = vmul.f32 %v3006_v26, %v398_v38  ;;  %v1017_v24 = vmax.f32 %v889_v44, 0.0  ;;  %v1075_v22 = vld [vmem:[%s3809_s4 + $0x40] sm:$0xff]  ;;  %v1082_v44 = vld [vmem:[%s3809_s4 + $0x78] sm:$0xff] }
 0x10b   : > { %2134 = vperm.xlu1 %2601, %v1992_v7   ;;  %1310 = vperm.xlu0 %2600, %v1160_v29   ;;  %v884_v47 = vadd.f32 %v744_v6, %v564_v32  ;;  %v886_v55 = vadd.f32 %v744_v6, %v566_v48  ;;  %v555_v56 = vmul.f32 %v3008_v27, %v393_v4  ;;  %v1074_v7 = vld [vmem:[%s3809_s4 + $0x38] sm:$0xff]  ;;  %v1073_v29 = vld [vmem:[%s3809_s4 + $0x30] sm:$0xff]  ;;  %v1080_v32 = vld [vmem:[%s3809_s4 + $0x68] sm:$0xff] }
 0x10c   : > { %1379 = vmatprep.subr.mxu0 %v1016_v34  ;;  %1636 = vmatprep.subr.mxu1 %v1018_v35  ;;  %v556_v2 = vmul.f32 %v3004_v25, %v393_v4  ;;  %v883_v57 = vadd.f32 %v744_v6, %v563_v31  ;;  %v885_v58 = vadd.f32 %v744_v6, %v565_v37  ;;  %v1994_v25 = vld [vmem:[%s3811_s6 + $0xe8] sm:$0xff]  ;;  %v1077_v31 = vld [vmem:[%s3809_s4 + $0x50] sm:$0xff]  ;;  %v1079_v43 = vld [vmem:[%s3809_s4 + $0x60] sm:$0xff] }
 0x10d   : > { %1380 = vmatpush2.msra.mxu0 %v1015_v53  ;;  %v557_v59 = vmul.f32 %v3010_v28, %v393_v4  ;;  %v558_v61 = vmul.f32 %v3006_v26, %v393_v4  ;;  %1637 = vmatpush2.msra.mxu1 %v1017_v24  ;;  %v1012_v50 = vmax.f32 %v884_v47, 0.0  ;;  %v1014_v63 = vmax.f32 %v886_v55, 0.0  ;;  %v1162_v28 = vld [vmem:[%s3810_s5 + $0xf8] sm:$0xff]  ;;  %v1081_v37 = vld [vmem:[%s3809_s4 + $0x70] sm:$0xff]  ;;  %v1084_v48 = vld [vmem:[%s3809_s4 + $0x88] sm:$0xff] }
 0x10e   : > { %v734_v45 = vpop.permute.xlu1 %733  ;;  %v739_v49 = vpop.permute.xlu0 %738  ;;  %v1011_v13 = vmax.f32 %v883_v57, 0.0  ;;  %v1013_v51 = vmax.f32 %v885_v58, 0.0  ;;  %v1083_v4 = vld [vmem:[%s3809_s4 + $0x80] sm:$0xff]  ;;  %v1086_v6 = vld [vmem:[%s3809_s4 + $0x98] sm:$0xff]  ;;  %v1085_v34 = vld [vmem:[%s3809_s4 + $0x90] sm:$0xff] }
 0x10f   : > { %2139 = vperm.xlu1 %2601, %v1993_v30   ;;  %1315 = vperm.xlu0 %2600, %v1161_v54   ;;  %v880_v0 = vadd.f32 %v739_v49, %v560_v41  ;;  %v882_v27 = vadd.f32 %v739_v49, %v562_v46  ;;  %v879_v26 = vadd.f32 %v739_v49, %v559_v42  ;;  %v1088_v35 = vld [vmem:[%s3809_s4 + $0xa8] sm:$0xff]  ;;  %v1087_v42 = vld [vmem:[%s3809_s4 + $0xa0] sm:$0xff]  ;;  %v1090_v41 = vld [vmem:[%s3809_s4 + $0xb8] sm:$0xff] }
 0x110   : > { %1381 = vmatprep.subr.mxu0 %v1012_v50  ;;  %1638 = vmatprep.subr.mxu1 %v1014_v63  ;;  %v881_v3 = vadd.f32 %v739_v49, %v561_v52  ;;  %v876_v10 = vadd.f32 %v734_v45, %v556_v2  ;;  %v878_v12 = vadd.f32 %v734_v45, %v558_v61  ;;  %v1089_v52 = vld [vmem:[%s3809_s4 + $0xb0] sm:$0xff]  ;;  %v1092_v53 = vld [vmem:[%s3809_s4 + $0xc8] sm:$0xff]  ;;  %v1091_v46 = vld [vmem:[%s3809_s4 + $0xc0] sm:$0xff] }
 0x111   : > { %1382 = vmatpush2.msra.mxu0 %v1011_v13  ;;  %1639 = vmatpush2.msra.mxu1 %v1013_v51  ;;  %v1008_v60 = vmax.f32 %v880_v0, 0.0  ;;  %v1010_v9 = vmax.f32 %v882_v27, 0.0  ;;  %v1007_v14 = vmax.f32 %v879_v26, 0.0  ;;  %v875_v21 = vadd.f32 %v734_v45, %v555_v56  ;;  %v1094_v30 = vld [vmem:[%s3809_s4 + $0xd8] sm:$0xff]  ;;  %v1093_v54 = vld [vmem:[%s3809_s4 + $0xd0] sm:$0xff]  ;;  %v1096_v24 = vld [vmem:[%s3809_s4 + $0xe8] sm:$0xff] }
 0x112   : > { %v1009_v15 = vmax.f32 %v881_v3, 0.0  ;;  %v877_v1 = vadd.f32 %v734_v45, %v557_v59  ;;  %v1004_v62 = vmax.f32 %v876_v10, 0.0  ;;  %v1006_v33 = vmax.f32 %v878_v12, 0.0  ;;  %v1095_v47 = vld [vmem:[%s3809_s4 + $0xe0] sm:$0xff]  ;;  %v1098_v55 = vld [vmem:[%s3809_s4 + $0xf8] sm:$0xff]  ;;  %v1097_v56 = vld [vmem:[%s3809_s4 + $0xf0] sm:$0xff] }
 0x113   : > { %2144 = vperm.xlu1 %2601, %v1994_v25   ;;  %1320 = vperm.xlu0 %2600, %v1162_v28   ;;  %v1003_v38 = vmax.f32 %v875_v21, 0.0  ;;  %v1100_v2 = vld [vmem:[%s3809_s4 + $0x108] sm:$0xff]  ;;  %v1099_v57 = vld [vmem:[%s3809_s4 + $0x100] sm:$0xff]  ;;  %v1102_v58 = vld [vmem:[%s3809_s4 + $0x118] sm:$0xff] }
 0x114   : > { %1383 = vmatprep.subr.mxu0 %v1008_v60  ;;  %1640 = vmatprep.subr.mxu1 %v1010_v9  ;;  %v1005_v18 = vmax.f32 %v877_v1, 0.0  ;;  %v1101_v59 = vld [vmem:[%s3809_s4 + $0x110] sm:$0xff]  ;;  %v1104_v61 = vld [vmem:[%s3809_s4 + $0x128] sm:$0xff]  ;;  %v1103_v45 = vld [vmem:[%s3809_s4 + $0x120] sm:$0xff] }
 0x115   : > { %1384 = vmatpush2.msra.mxu0 %v1007_v14  ;;  %1641 = vmatpush2.msra.mxu1 %v1009_v15  ;;  %v1106_v49 = vld [vmem:[%s3809_s4 + $0x138] sm:$0xff]  ;;  %v1105_v50 = vld [vmem:[%s3809_s4 + $0x130] sm:$0xff]  ;;  %v1108_v63 = vld [vmem:[%s3809_s4 + $0x148] sm:$0xff] }
 0x116   : > { %1385 = vmatprep.subr.mxu0 %v1004_v62  ;;  %1642 = vmatprep.subr.mxu1 %v1006_v33  ;;  %v1107_v13 = vld [vmem:[%s3809_s4 + $0x140] sm:$0xff]  ;;  %v1110_v51 = vld [vmem:[%s3809_s4 + $0x158] sm:$0xff]  ;;  %v1109_v0 = vld [vmem:[%s3809_s4 + $0x150] sm:$0xff] }
 0x117   : > { %2154 = vperm.xlu1 %2601, %v1996_v16   ;;  %2149 = vperm.xlu0 %2600, %v1995_v17   ;;  %v1112_v27 = vld [vmem:[%s3809_s4 + $0x168] sm:$0xff]  ;;  %v1111_v25 = vld [vmem:[%s3809_s4 + $0x160] sm:$0xff]  ;;  %v1114_v28 = vld [vmem:[%s3809_s4 + $0x178] sm:$0xff] }
 0x118   : > { %1386 = vmatpush2.msra.mxu0 %v1003_v38  ;;  %1643 = vmatpush2.msra.mxu1 %v1005_v18  ;;  %v1113_v26 = vld [vmem:[%s3809_s4 + $0x170] sm:$0xff]  ;;  %v1116_v3 = vld [vmem:[%s3809_s4 + $0x188] sm:$0xff]  ;;  %v1115_v10 = vld [vmem:[%s3809_s4 + $0x180] sm:$0xff]  ;;  %v1166_v38 = vpop.permute.xlu0 %1165 }
 0x119   : > { %1388 = vmatmul.mubr.f32.vlgmr.msra.gmra.mxu0 %v1067_v39  ;;  %1645 = vmatmul.mubr.f32.vlgmr.msra.gmra.mxu1 %v1067_v39  ;;  %v1118_v60 = vld [vmem:[%s3809_s4 + $0x198] sm:$0xff]  ;;  %v1117_v9 = vld [vmem:[%s3809_s4 + $0x190] sm:$0xff]  ;;  %v1120_v12 = vld [vmem:[%s3809_s4 + $0x1a8] sm:$0xff] }
 0x11a   : > { %1393 = vmatprep.mubr.f32.mxu0 %v1070_v19  ;;  %1650 = vmatprep.mubr.f32.mxu1 %v1070_v19  ;;  %v1119_v14 = vld [vmem:[%s3809_s4 + $0x1a0] sm:$0xff]  ;;  %v1122_v15 = vld [vmem:[%s3809_s4 + $0x1b8] sm:$0xff]  ;;  %v1121_v21 = vld [vmem:[%s3809_s4 + $0x1b0] sm:$0xff]  ;;  %v1171_v19 = vpop.permute.xlu1 %1170 }
 0x11b   : > { %v1124_v1 = vld [vmem:[%s3809_s4 + $0x1c8] sm:$0xff]  ;;  %v1123_v16 = vld [vmem:[%s3809_s4 + $0x1c0] sm:$0xff]  ;;  %v1126_v17 = vld [vmem:[%s3809_s4 + $0x1d8] sm:$0xff] }
 0x11c   : > { %v1125_v62 = vld [vmem:[%s3809_s4 + $0x1d0] sm:$0xff]  ;;  %v1128_v33 = vld [vmem:[%s3809_s4 + $0x1e8] sm:$0xff]  ;;  %v1127_v18 = vld [vmem:[%s3809_s4 + $0x1e0] sm:$0xff] }
 0x11d   : > { %1394 = vmatmul.mubr.f32.gmra.mxu0 %v1069_v40  ;;  %1651 = vmatmul.mubr.f32.gmra.mxu1 %v1069_v40  ;;  %v1130_v39 = vld [vmem:[%s3809_s4 + $0x1f8] sm:$0xff]  ;;  %v1129_v40 = vld [vmem:[%s3809_s4 + $0x1f0] sm:$0xff] }
 0x11e   : > { %1399 = vmatprep.mubr.f32.mxu0 %v1072_v20  ;;  %1656 = vmatprep.mubr.f32.mxu1 %v1072_v20  ;;  %v3583_v20 = vpop.permute.xlu0 %1175 }
 0x121   : > { %1400 = vmatmul.mubr.f32.gmra.mxu0 %v1071_v23  ;;  %1657 = vmatmul.mubr.f32.gmra.mxu1 %v1071_v23  ;;  %v3585_v23 = vpop.permute.xlu1 %1180 }
 0x122   : > { %1405 = vmatprep.mubr.f32.mxu0 %v1074_v7  ;;  %1662 = vmatprep.mubr.f32.mxu1 %v1074_v7  ;;  %v3587_v7 = vpop.permute.xlu0 %1185 }
 0x125   : > { %1406 = vmatmul.mubr.f32.gmra.mxu0 %v1073_v29  ;;  %1663 = vmatmul.mubr.f32.gmra.mxu1 %v1073_v29  ;;  %v3589_v29 = vpop.permute.xlu1 %1190 }
 0x126   : > { %1411 = vmatprep.mubr.f32.mxu0 %v1076_v36  ;;  %1668 = vmatprep.mubr.f32.mxu1 %v1076_v36  ;;  %v3591_v36 = vpop.permute.xlu0 %1195 }
 0x129   : > { %1412 = vmatmul.mubr.f32.gmra.mxu0 %v1075_v22  ;;  %1669 = vmatmul.mubr.f32.gmra.mxu1 %v1075_v22  ;;  %v3593_v22 = vpop.permute.xlu1 %1200 }
 0x12a   : > { %1417 = vmatprep.mubr.f32.mxu0 %v1078_v8  ;;  %1674 = vmatprep.mubr.f32.mxu1 %v1078_v8  ;;  %v3595_v8 = vpop.permute.xlu0 %1205 }
 0x12d   : > { %1418 = vmatmul.mubr.f32.gmra.mxu0 %v1077_v31  ;;  %1675 = vmatmul.mubr.f32.gmra.mxu1 %v1077_v31  ;;  %v3597_v31 = vpop.permute.xlu1 %1210 }
 0x12e   : > { %1423 = vmatprep.mubr.f32.mxu0 %v1080_v32  ;;  %1680 = vmatprep.mubr.f32.mxu1 %v1080_v32  ;;  %v3599_v32 = vpop.permute.xlu0 %1215 }
 0x131   : > { %1424 = vmatmul.mubr.f32.gmra.mxu0 %v1079_v43  ;;  %1681 = vmatmul.mubr.f32.gmra.mxu1 %v1079_v43  ;;  %v3601_v43 = vpop.permute.xlu1 %1220 }
 0x132   : > { %1429 = vmatprep.mubr.f32.mxu0 %v1082_v44  ;;  %1686 = vmatprep.mubr.f32.mxu1 %v1082_v44  ;;  %v3603_v44 = vpop.permute.xlu0 %1225 }
 0x135   : > { %1430 = vmatmul.mubr.f32.gmra.mxu0 %v1081_v37  ;;  %1687 = vmatmul.mubr.f32.gmra.mxu1 %v1081_v37  ;;  %v3605_v37 = vpop.permute.xlu1 %1230 }
 0x136   : > { %1435 = vmatprep.mubr.f32.mxu0 %v1084_v48  ;;  %1692 = vmatprep.mubr.f32.mxu1 %v1084_v48  ;;  %v3607_v48 = vpop.permute.xlu0 %1235 }
 0x139   : > { %1436 = vmatmul.mubr.f32.gmra.mxu0 %v1083_v4  ;;  %1693 = vmatmul.mubr.f32.gmra.mxu1 %v1083_v4  ;;  %v3609_v4 = vpop.permute.xlu1 %1240 }
 0x13a   : > { %1441 = vmatprep.mubr.f32.mxu0 %v1086_v6  ;;  %1698 = vmatprep.mubr.f32.mxu1 %v1086_v6  ;;  %v3611_v6 = vpop.permute.xlu0 %1245 }
 0x13d   : > { %1442 = vmatmul.mubr.f32.gmra.mxu0 %v1085_v34  ;;  %1699 = vmatmul.mubr.f32.gmra.mxu1 %v1085_v34  ;;  %v3613_v34 = vpop.permute.xlu1 %1250 }
 0x13e   : > { %1447 = vmatprep.mubr.f32.mxu0 %v1088_v35  ;;  %1704 = vmatprep.mubr.f32.mxu1 %v1088_v35  ;;  %v3615_v35 = vpop.permute.xlu0 %1255 }
 0x141   : > { %1448 = vmatmul.mubr.f32.gmra.mxu0 %v1087_v42  ;;  %1705 = vmatmul.mubr.f32.gmra.mxu1 %v1087_v42  ;;  %v3617_v42 = vpop.permute.xlu1 %1260 }
 0x142   : > { %1453 = vmatprep.mubr.f32.mxu0 %v1090_v41  ;;  %1710 = vmatprep.mubr.f32.mxu1 %v1090_v41  ;;  %v3619_v41 = vpop.permute.xlu0 %1265 }
 0x145   : > { %1454 = vmatmul.mubr.f32.gmra.mxu0 %v1089_v52  ;;  %1711 = vmatmul.mubr.f32.gmra.mxu1 %v1089_v52  ;;  %v3621_v52 = vpop.permute.xlu1 %1270 }
 0x146   : > { %1459 = vmatprep.mubr.f32.mxu0 %v1092_v53  ;;  %1716 = vmatprep.mubr.f32.mxu1 %v1092_v53  ;;  %v3623_v53 = vpop.permute.xlu0 %1275 }
 0x149   : > { %1460 = vmatmul.mubr.f32.gmra.mxu0 %v1091_v46  ;;  %1717 = vmatmul.mubr.f32.gmra.mxu1 %v1091_v46  ;;  %v3625_v46 = vpop.permute.xlu1 %1280 }
 0x14a   : > { %1465 = vmatprep.mubr.f32.mxu0 %v1094_v30  ;;  %1722 = vmatprep.mubr.f32.mxu1 %v1094_v30  ;;  %v3627_v30 = vpop.permute.xlu0 %1285 }
 0x14d   : > { %1466 = vmatmul.mubr.f32.gmra.mxu0 %v1093_v54  ;;  %1723 = vmatmul.mubr.f32.gmra.mxu1 %v1093_v54 }
 0x14e   : > { %1471 = vmatprep.mubr.f32.mxu0 %v1096_v24  ;;  %1728 = vmatprep.mubr.f32.mxu1 %v1096_v24 }
 0x151   : > { %1472 = vmatmul.mubr.f32.gmra.mxu0 %v1095_v47  ;;  %1729 = vmatmul.mubr.f32.gmra.mxu1 %v1095_v47  ;;  %v3629_v47 = vpop.permute.xlu1 %1290 }
 0x152   : > { %1477 = vmatprep.mubr.f32.mxu0 %v1098_v55  ;;  %1734 = vmatprep.mubr.f32.mxu1 %v1098_v55 }
 0x155   : > { %1478 = vmatmul.mubr.f32.gmra.mxu0 %v1097_v56  ;;  %1735 = vmatmul.mubr.f32.gmra.mxu1 %v1097_v56 }
 0x156   : > { %1483 = vmatprep.mubr.f32.mxu0 %v1100_v2  ;;  %1740 = vmatprep.mubr.f32.mxu1 %v1100_v2  ;;  %v3631_v2 = vpop.permute.xlu0 %1295 }
 0x159   : > { %1484 = vmatmul.mubr.f32.gmra.mxu0 %v1099_v57  ;;  %1741 = vmatmul.mubr.f32.gmra.mxu1 %v1099_v57 }
 0x15a   : > { %1489 = vmatprep.mubr.f32.mxu0 %v1102_v58  ;;  %1746 = vmatprep.mubr.f32.mxu1 %v1102_v58 }
 0x15d   : > { %1490 = vmatmul.mubr.f32.gmra.mxu0 %v1101_v59  ;;  %1747 = vmatmul.mubr.f32.gmra.mxu1 %v1101_v59 }
 0x15e   : > { %1495 = vmatprep.mubr.f32.mxu0 %v1104_v61  ;;  %1752 = vmatprep.mubr.f32.mxu1 %v1104_v61 }
 0x161   : > { %1496 = vmatmul.mubr.f32.gmra.mxu0 %v1103_v45  ;;  %1753 = vmatmul.mubr.f32.gmra.mxu1 %v1103_v45 }
 0x162   : > { %1501 = vmatprep.mubr.f32.mxu0 %v1106_v49  ;;  %1758 = vmatprep.mubr.f32.mxu1 %v1106_v49 }
 0x165   : > { %1502 = vmatmul.mubr.f32.gmra.mxu0 %v1105_v50  ;;  %1759 = vmatmul.mubr.f32.gmra.mxu1 %v1105_v50 }
 0x166   : > { %1507 = vmatprep.mubr.f32.mxu0 %v1108_v63  ;;  %1764 = vmatprep.mubr.f32.mxu1 %v1108_v63 }
 0x169   : > { %1508 = vmatmul.mubr.f32.gmra.mxu0 %v1107_v13  ;;  %1765 = vmatmul.mubr.f32.gmra.mxu1 %v1107_v13 }
 0x16a   : > { %1513 = vmatprep.mubr.f32.mxu0 %v1110_v51  ;;  %1770 = vmatprep.mubr.f32.mxu1 %v1110_v51 }
 0x16d   : > { %1514 = vmatmul.mubr.f32.gmra.mxu0 %v1109_v0  ;;  %1771 = vmatmul.mubr.f32.gmra.mxu1 %v1109_v0  ;;  %v2000_v0 = vpop.permute.xlu1 %1999 }
 0x16e   : > { %1519 = vmatprep.mubr.f32.mxu0 %v1112_v27  ;;  %1776 = vmatprep.mubr.f32.mxu1 %v1112_v27 }
 0x171   : > { %1520 = vmatmul.mubr.f32.gmra.mxu0 %v1111_v25  ;;  %1777 = vmatmul.mubr.f32.gmra.mxu1 %v1111_v25 }
 0x172   : > { %1525 = vmatprep.mubr.f32.mxu0 %v1114_v28  ;;  %1782 = vmatprep.mubr.f32.mxu1 %v1114_v28 }
 0x175   : > { %1526 = vmatmul.mubr.f32.gmra.mxu0 %v1113_v26  ;;  %1783 = vmatmul.mubr.f32.gmra.mxu1 %v1113_v26 }
 0x176   : > { %1531 = vmatprep.mubr.f32.mxu0 %v1116_v3  ;;  %1788 = vmatprep.mubr.f32.mxu1 %v1116_v3 }
 0x179   : > { %1532 = vmatmul.mubr.f32.gmra.mxu0 %v1115_v10  ;;  %1789 = vmatmul.mubr.f32.gmra.mxu1 %v1115_v10 }
 0x17a   : > { %1537 = vmatprep.mubr.f32.mxu0 %v1118_v60  ;;  %1794 = vmatprep.mubr.f32.mxu1 %v1118_v60 }
 0x17d   : > { %1538 = vmatmul.mubr.f32.gmra.mxu0 %v1117_v9  ;;  %1795 = vmatmul.mubr.f32.gmra.mxu1 %v1117_v9 }
 0x17e   : > { %1543 = vmatprep.mubr.f32.mxu0 %v1120_v12  ;;  %1800 = vmatprep.mubr.f32.mxu1 %v1120_v12 }
 0x181   : > { %1544 = vmatmul.mubr.f32.gmra.mxu0 %v1119_v14  ;;  %1801 = vmatmul.mubr.f32.gmra.mxu1 %v1119_v14 }
 0x182   : > { %1549 = vmatprep.mubr.f32.mxu0 %v1122_v15  ;;  %1806 = vmatprep.mubr.f32.mxu1 %v1122_v15  ;;  %v2005_v15 = vpop.permute.xlu0 %2004 }
 0x185   : > { %1550 = vmatmul.mubr.f32.gmra.mxu0 %v1121_v21  ;;  %1807 = vmatmul.mubr.f32.gmra.mxu1 %v1121_v21 }
 0x186   : > { %1555 = vmatprep.mubr.f32.mxu0 %v1124_v1  ;;  %1812 = vmatprep.mubr.f32.mxu1 %v1124_v1 }
 0x189   : > { %1556 = vmatmul.mubr.f32.gmra.mxu0 %v1123_v16  ;;  %1813 = vmatmul.mubr.f32.gmra.mxu1 %v1123_v16 }
 0x18a   : > { %1561 = vmatprep.mubr.f32.mxu0 %v1126_v17  ;;  %1818 = vmatprep.mubr.f32.mxu1 %v1126_v17 }
 0x18d   : > { %1562 = vmatmul.mubr.f32.gmra.mxu0 %v1125_v62  ;;  %1819 = vmatmul.mubr.f32.gmra.mxu1 %v1125_v62 }
 0x18e   : > { %1567 = vmatprep.mubr.f32.mxu0 %v1128_v33  ;;  %1824 = vmatprep.mubr.f32.mxu1 %v1128_v33 }
 0x191   : > { %1568 = vmatmul.mubr.f32.gmra.mxu0 %v1127_v18  ;;  %1825 = vmatmul.mubr.f32.gmra.mxu1 %v1127_v18 }
 0x192   : > { %1573 = vmatprep.mubr.f32.mxu0 %v1130_v39  ;;  %1830 = vmatprep.mubr.f32.mxu1 %v1130_v39 }
 0x195   : > { %1574 = vmatmul.mubr.f32.gmra.mxu0 %v1129_v40  ;;  %1831 = vmatmul.mubr.f32.gmra.mxu1 %v1129_v40 }
 0x1d9   : > { %v1389_v54 = vpop.f32.mrf.mxu0  ;;  %v1646_v24 = vpop.f32.mrf.mxu1 }
 0x1da   : > { %v1390_v57 = vadd.f32 %v1389_v54, %v1166_v38  ;;  %v1647_v58 = vadd.f32 %v1646_v24, %v1166_v38 }
 0x1db   : > { %v1391_v55 = vpop.f32.mrf.mxu0  ;;  %v1648_v56 = vpop.f32.mrf.mxu1 }
 0x1dc   : > { %v1392_v59 = vadd.f32 %v1391_v55, %v1166_v38  ;;  %v1649_v61 = vadd.f32 %v1648_v56, %v1166_v38  ;;  %v1837_v27 = vmax.f32 %v1390_v57, 0.0  ;;  %v1839_v25 = vmax.f32 %v1647_v58, 0.0 }
 0x1dd   : > { %v1395_v45 = vpop.f32.mrf.mxu0  ;;  %v1652_v49 = vpop.f32.mrf.mxu1 }
 0x1de   : > { %v1396_v50 = vadd.f32 %v1395_v45, %v1171_v19  ;;  %v1653_v63 = vadd.f32 %v1652_v49, %v1171_v19  ;;  %v1838_v3 = vmax.f32 %v1392_v59, 0.0  ;;  %v1840_v10 = vmax.f32 %v1649_v61, 0.0  ;;  %v2010_v61 = vpop.permute.xlu1 %2009 }
 0x1df   : > { %v1397_v13 = vpop.f32.mrf.mxu0  ;;  %v1654_v51 = vpop.f32.mrf.mxu1  ;;  %v2157_v39 = vmul.f32 %v2000_v0, %v1837_v27  ;;  %v2159_v40 = vmul.f32 %v2000_v0, %v1839_v25 }
 0x1e0   : > { %v1398_v28 = vadd.f32 %v1397_v13, %v1171_v19  ;;  %v1655_v26 = vadd.f32 %v1654_v51, %v1171_v19  ;;  %v1841_v60 = vmax.f32 %v1396_v50, 0.0  ;;  %v1843_v9 = vmax.f32 %v1653_v63, 0.0 }
 0x1e1   : > { %v1401_v12 = vpop.f32.mrf.mxu0  ;;  %v1658_v14 = vpop.f32.mrf.mxu1  ;;  %v2158_v24 = vmul.f32 %v2000_v0, %v1838_v3  ;;  %v2160_v55 = vmul.f32 %v2000_v0, %v1840_v10 }
 0x1e2   : > { %v1842_v21 = vmax.f32 %v1398_v28, 0.0  ;;  %v1844_v1 = vmax.f32 %v1655_v26, 0.0  ;;  %v1402_v16 = vadd.f32 %v1401_v12, %v3583_v20  ;;  %v1659_v17 = vadd.f32 %v1658_v14, %v3583_v20 }
 0x1e3   : > { %v2161_v62 = vmul.f32 %v2005_v15, %v1841_v60  ;;  %v2163_v33 = vmul.f32 %v2005_v15, %v1843_v9  ;;  %v1403_v38 = vpop.f32.mrf.mxu0  ;;  %v1660_v18 = vpop.f32.mrf.mxu1 }
 0x1e4   : > { %v1845_v19 = vmax.f32 %v1402_v16, 0.0  ;;  %v1847_v54 = vmax.f32 %v1659_v17, 0.0  ;;  %v1404_v56 = vadd.f32 %v1403_v38, %v3583_v20  ;;  %v1661_v57 = vadd.f32 %v1660_v18, %v3583_v20 }
 0x1e5   : > { %v1407_v58 = vpop.f32.mrf.mxu0  ;;  %v1664_v59 = vpop.f32.mrf.mxu1  ;;  %v2285_v45 = vadd.f32 %v2161_v62, %v2157_v39  ;;  %v2359_v49 = vadd.f32 %v2163_v33, %v2159_v40  ;;  %v2162_v50 = vmul.f32 %v2005_v15, %v1842_v21  ;;  %v2164_v63 = vmul.f32 %v2005_v15, %v1844_v1 }
 0x1e6   : > { %v1846_v13 = vmax.f32 %v1404_v56, 0.0  ;;  %v1848_v51 = vmax.f32 %v1661_v57, 0.0  ;;  %v1408_v27 = vadd.f32 %v1407_v58, %v3585_v23  ;;  %v1665_v25 = vadd.f32 %v1664_v59, %v3585_v23  ;;  %v2015_v1 = vpop.permute.xlu0 %2014 }
 0x1e7   : > { %v1409_v28 = vpop.f32.mrf.mxu0  ;;  %v1666_v26 = vpop.f32.mrf.mxu1  ;;  %v2165_v0 = vmul.f32 %v2010_v61, %v1845_v19  ;;  %v2167_v3 = vmul.f32 %v2010_v61, %v1847_v54  ;;  %v2322_v38 = vadd.f32 %v2162_v50, %v2158_v24  ;;  %v2396_v18 = vadd.f32 %v2164_v63, %v2160_v55 }
 0x1e8   : > { %v1410_v10 = vadd.f32 %v1409_v28, %v3585_v23  ;;  %v1667_v20 = vadd.f32 %v1666_v26, %v3585_v23  ;;  %v2166_v60 = vmul.f32 %v2010_v61, %v1846_v13  ;;  %v2168_v9 = vmul.f32 %v2010_v61, %v1848_v51  ;;  %v2020_v28 = vpop.permute.xlu1 %2019 }
 0x1e9   : > { %v1849_v12 = vmax.f32 %v1408_v27, 0.0  ;;  %v1851_v14 = vmax.f32 %v1665_v25, 0.0  ;;  %v1413_v21 = vpop.f32.mrf.mxu0  ;;  %v1670_v15 = vpop.f32.mrf.mxu1  ;;  %v2286_v23 = vadd.f32 %v2285_v45, %v2165_v0  ;;  %v2360_v56 = vadd.f32 %v2359_v49, %v2167_v3 }
 0x1ea   : > { %v1850_v16 = vmax.f32 %v1410_v10, 0.0  ;;  %v1852_v17 = vmax.f32 %v1667_v20, 0.0  ;;  %v1414_v62 = vadd.f32 %v1413_v21, %v3587_v7  ;;  %v1671_v33 = vadd.f32 %v1670_v15, %v3587_v7 }
 0x1eb   : > { %v2169_v39 = vmul.f32 %v2015_v1, %v1849_v12  ;;  %v2171_v40 = vmul.f32 %v2015_v1, %v1851_v14  ;;  %v1415_v19 = vpop.f32.mrf.mxu0  ;;  %v1672_v54 = vpop.f32.mrf.mxu1  ;;  %v2323_v59 = vadd.f32 %v2322_v38, %v2166_v60  ;;  %v2397_v61 = vadd.f32 %v2396_v18, %v2168_v9 }
 0x1ec   : > { %v1853_v57 = vmax.f32 %v1414_v62, 0.0  ;;  %v1855_v58 = vmax.f32 %v1671_v33, 0.0  ;;  %v1416_v13 = vadd.f32 %v1415_v19, %v3587_v7  ;;  %v1673_v51 = vadd.f32 %v1672_v54, %v3587_v7 }
 0x1ed   : > { %v1419_v27 = vpop.f32.mrf.mxu0  ;;  %v1676_v25 = vpop.f32.mrf.mxu1  ;;  %v2287_v26 = vadd.f32 %v2286_v23, %v2169_v39  ;;  %v2361_v24 = vadd.f32 %v2360_v56, %v2171_v40  ;;  %v2170_v55 = vmul.f32 %v2015_v1, %v1850_v16  ;;  %v2172_v50 = vmul.f32 %v2015_v1, %v1852_v17 }
 0x1ee   : > { %v1854_v63 = vmax.f32 %v1416_v13, 0.0  ;;  %v1856_v10 = vmax.f32 %v1673_v51, 0.0  ;;  %v1420_v45 = vadd.f32 %v1419_v27, %v3589_v29  ;;  %v1677_v49 = vadd.f32 %v1676_v25, %v3589_v29  ;;  %v2025_v17 = vpop.permute.xlu0 %2024 }
 0x1ef   : > { %v1421_v0 = vpop.f32.mrf.mxu0  ;;  %v1678_v3 = vpop.f32.mrf.mxu1  ;;  %v2173_v20 = vmul.f32 %v2020_v28, %v1853_v57  ;;  %v2175_v60 = vmul.f32 %v2020_v28, %v1855_v58  ;;  %v2324_v39 = vadd.f32 %v2323_v59, %v2170_v55  ;;  %v2398_v40 = vadd.f32 %v2397_v61, %v2172_v50 }
 0x1f0   : > { %v1422_v9 = vadd.f32 %v1421_v0, %v3589_v29  ;;  %v1679_v7 = vadd.f32 %v1678_v3, %v3589_v29  ;;  %v2174_v12 = vmul.f32 %v2020_v28, %v1854_v63  ;;  %v2176_v14 = vmul.f32 %v2020_v28, %v1856_v10 }
 0x1f1   : > { %v1857_v21 = vmax.f32 %v1420_v45, 0.0  ;;  %v1859_v15 = vmax.f32 %v1677_v49, 0.0  ;;  %v1425_v16 = vpop.f32.mrf.mxu0  ;;  %v1682_v1 = vpop.f32.mrf.mxu1  ;;  %v2288_v29 = vadd.f32 %v2287_v26, %v2173_v20  ;;  %v2362_v57 = vadd.f32 %v2361_v24, %v2175_v60 }
 0x1f2   : > { %v1858_v62 = vmax.f32 %v1422_v9, 0.0  ;;  %v1860_v33 = vmax.f32 %v1679_v7, 0.0  ;;  %v1426_v38 = vadd.f32 %v1425_v16, %v3591_v36  ;;  %v1683_v18 = vadd.f32 %v1682_v1, %v3591_v36  ;;  %v2030_v45 = vpop.permute.xlu1 %2029 }
 0x1f3   : > { %v2177_v19 = vmul.f32 %v2025_v17, %v1857_v21  ;;  %v2179_v54 = vmul.f32 %v2025_v17, %v1859_v15  ;;  %v1427_v23 = vpop.f32.mrf.mxu0  ;;  %v1684_v56 = vpop.f32.mrf.mxu1  ;;  %v2325_v51 = vadd.f32 %v2324_v39, %v2174_v12  ;;  %v2399_v27 = vadd.f32 %v2398_v40, %v2176_v14 }
 0x1f4   : > { %v1861_v58 = vmax.f32 %v1426_v38, 0.0  ;;  %v1863_v13 = vmax.f32 %v1683_v18, 0.0  ;;  %v1428_v25 = vadd.f32 %v1427_v23, %v3591_v36  ;;  %v1685_v28 = vadd.f32 %v1684_v56, %v3591_v36 }
 0x1f5   : > { %v1431_v63 = vpop.f32.mrf.mxu0  ;;  %v1688_v10 = vpop.f32.mrf.mxu1  ;;  %v2289_v49 = vadd.f32 %v2288_v29, %v2177_v19  ;;  %v2363_v59 = vadd.f32 %v2362_v57, %v2179_v54  ;;  %v2178_v61 = vmul.f32 %v2025_v17, %v1858_v62  ;;  %v2180_v55 = vmul.f32 %v2025_v17, %v1860_v33 }
 0x1f6   : > { %v1862_v50 = vmax.f32 %v1428_v25, 0.0  ;;  %v1864_v0 = vmax.f32 %v1685_v28, 0.0  ;;  %v1432_v26 = vadd.f32 %v1431_v63, %v3593_v22  ;;  %v1689_v24 = vadd.f32 %v1688_v10, %v3593_v22  ;;  %v2035_v17 = vpop.permute.xlu0 %2034 }
 0x1f7   : > { %v1433_v3 = vpop.f32.mrf.mxu0  ;;  %v1690_v20 = vpop.f32.mrf.mxu1  ;;  %v2181_v60 = vmul.f32 %v2030_v45, %v1861_v58  ;;  %v2183_v9 = vmul.f32 %v2030_v45, %v1863_v13  ;;  %v2326_v39 = vadd.f32 %v2325_v51, %v2178_v61  ;;  %v2400_v40 = vadd.f32 %v2399_v27, %v2180_v55 }
 0x1f8   : > { %v1434_v7 = vadd.f32 %v1433_v3, %v3593_v22  ;;  %v1691_v36 = vadd.f32 %v1690_v20, %v3593_v22  ;;  %v2182_v12 = vmul.f32 %v2030_v45, %v1862_v50  ;;  %v2184_v14 = vmul.f32 %v2030_v45, %v1864_v0  ;;  %v2040_v50 = vpop.permute.xlu1 %2039 }
 0x1f9   : > { %v1865_v21 = vmax.f32 %v1432_v26, 0.0  ;;  %v1867_v15 = vmax.f32 %v1689_v24, 0.0  ;;  %v1437_v16 = vpop.f32.mrf.mxu0  ;;  %v1694_v1 = vpop.f32.mrf.mxu1  ;;  %v2290_v22 = vadd.f32 %v2289_v49, %v2181_v60  ;;  %v2364_v29 = vadd.f32 %v2363_v59, %v2183_v9 }
 0x1fa   : > { %v1866_v62 = vmax.f32 %v1434_v7, 0.0  ;;  %v1868_v33 = vmax.f32 %v1691_v36, 0.0  ;;  %v1438_v38 = vadd.f32 %v1437_v16, %v3595_v8  ;;  %v1695_v18 = vadd.f32 %v1694_v1, %v3595_v8  ;;  %v2045_v16 = vpop.permute.xlu0 %2044 }
 0x1fb   : > { %v2185_v19 = vmul.f32 %v2035_v17, %v1865_v21  ;;  %v2187_v54 = vmul.f32 %v2035_v17, %v1867_v15  ;;  %v1439_v23 = vpop.f32.mrf.mxu0  ;;  %v1696_v56 = vpop.f32.mrf.mxu1  ;;  %v2327_v13 = vadd.f32 %v2326_v39, %v2182_v12  ;;  %v2401_v25 = vadd.f32 %v2400_v40, %v2184_v14 }
 0x1fc   : > { %v1869_v57 = vmax.f32 %v1438_v38, 0.0  ;;  %v1871_v58 = vmax.f32 %v1695_v18, 0.0  ;;  %v1440_v28 = vadd.f32 %v1439_v23, %v3595_v8  ;;  %v1697_v63 = vadd.f32 %v1696_v56, %v3595_v8 }
 0x1fd   : > { %v1443_v10 = vpop.f32.mrf.mxu0  ;;  %v1700_v45 = vpop.f32.mrf.mxu1  ;;  %v2291_v0 = vadd.f32 %v2290_v22, %v2185_v19  ;;  %v2365_v51 = vadd.f32 %v2364_v29, %v2187_v54  ;;  %v2186_v27 = vmul.f32 %v2035_v17, %v1866_v62  ;;  %v2188_v61 = vmul.f32 %v2035_v17, %v1868_v33 }
 0x1fe   : > { %v1870_v55 = vmax.f32 %v1440_v28, 0.0  ;;  %v1872_v26 = vmax.f32 %v1697_v63, 0.0  ;;  %v1444_v49 = vadd.f32 %v1443_v10, %v3597_v31  ;;  %v1701_v59 = vadd.f32 %v1700_v45, %v3597_v31  ;;  %v2050_v45 = vpop.permute.xlu1 %2049 }
 0x1ff   : > { %v1445_v24 = vpop.f32.mrf.mxu0  ;;  %v1702_v3 = vpop.f32.mrf.mxu1  ;;  %v2189_v20 = vmul.f32 %v2040_v50, %v1869_v57  ;;  %v2191_v60 = vmul.f32 %v2040_v50, %v1871_v58  ;;  %v2328_v38 = vadd.f32 %v2327_v13, %v2186_v27  ;;  %v2402_v18 = vadd.f32 %v2401_v25, %v2188_v61 }
 0x200   : > { %v1446_v9 = vadd.f32 %v1445_v24, %v3597_v31  ;;  %v1703_v8 = vadd.f32 %v1702_v3, %v3597_v31  ;;  %v2190_v7 = vmul.f32 %v2040_v50, %v1870_v55  ;;  %v2192_v36 = vmul.f32 %v2040_v50, %v1872_v26 }
 0x201   : > { %v1873_v12 = vmax.f32 %v1444_v49, 0.0  ;;  %v1875_v14 = vmax.f32 %v1701_v59, 0.0  ;;  %v1449_v21 = vpop.f32.mrf.mxu0  ;;  %v1706_v15 = vpop.f32.mrf.mxu1  ;;  %v2292_v31 = vadd.f32 %v2291_v0, %v2189_v20  ;;  %v2366_v23 = vadd.f32 %v2365_v51, %v2191_v60 }
 0x202   : > { %v1874_v1 = vmax.f32 %v1446_v9, 0.0  ;;  %v1876_v17 = vmax.f32 %v1703_v8, 0.0  ;;  %v1450_v62 = vadd.f32 %v1449_v21, %v3599_v32  ;;  %v1707_v33 = vadd.f32 %v1706_v15, %v3599_v32 }
 0x203   : > { %v2193_v39 = vmul.f32 %v2045_v16, %v1873_v12  ;;  %v2195_v40 = vmul.f32 %v2045_v16, %v1875_v14  ;;  %v1451_v19 = vpop.f32.mrf.mxu0  ;;  %v1708_v54 = vpop.f32.mrf.mxu1  ;;  %v2329_v29 = vadd.f32 %v2328_v38, %v2190_v7  ;;  %v2403_v57 = vadd.f32 %v2402_v18, %v2192_v36 }
 0x204   : > { %v1877_v56 = vmax.f32 %v1450_v62, 0.0  ;;  %v1879_v22 = vmax.f32 %v1707_v33, 0.0  ;;  %v1452_v58 = vadd.f32 %v1451_v19, %v3599_v32  ;;  %v1709_v28 = vadd.f32 %v1708_v54, %v3599_v32  ;;  %v2055_v12 = vpop.permute.xlu0 %2054 }
 0x205   : > { %v1455_v63 = vpop.f32.mrf.mxu0  ;;  %v1712_v10 = vpop.f32.mrf.mxu1  ;;  %v2293_v50 = vadd.f32 %v2292_v31, %v2193_v39  ;;  %v2367_v13 = vadd.f32 %v2366_v23, %v2195_v40  ;;  %v2194_v25 = vmul.f32 %v2045_v16, %v1874_v1  ;;  %v2196_v27 = vmul.f32 %v2045_v16, %v1876_v17 }
 0x206   : > { %v1878_v61 = vmax.f32 %v1452_v58, 0.0  ;;  %v1880_v55 = vmax.f32 %v1709_v28, 0.0  ;;  %v1456_v0 = vadd.f32 %v1455_v63, %v3601_v43  ;;  %v1713_v51 = vadd.f32 %v1712_v10, %v3601_v43  ;;  %v2060_v28 = vpop.permute.xlu1 %2059 }
 0x207   : > { %v1457_v26 = vpop.f32.mrf.mxu0  ;;  %v1714_v49 = vpop.f32.mrf.mxu1  ;;  %v2197_v59 = vmul.f32 %v2050_v45, %v1877_v56  ;;  %v2199_v24 = vmul.f32 %v2050_v45, %v1879_v22  ;;  %v2330_v1 = vadd.f32 %v2329_v29, %v2194_v25  ;;  %v2404_v17 = vadd.f32 %v2403_v57, %v2196_v27 }
 0x208   : > { %v1458_v3 = vadd.f32 %v1457_v26, %v3601_v43  ;;  %v1715_v32 = vadd.f32 %v1714_v49, %v3601_v43  ;;  %v2198_v20 = vmul.f32 %v2050_v45, %v1878_v61  ;;  %v2200_v60 = vmul.f32 %v2050_v45, %v1880_v55 }
 0x209   : > { %v1881_v9 = vmax.f32 %v1456_v0, 0.0  ;;  %v1883_v8 = vmax.f32 %v1713_v51, 0.0  ;;  %v1461_v7 = vpop.f32.mrf.mxu0  ;;  %v1718_v36 = vpop.f32.mrf.mxu1  ;;  %v2294_v43 = vadd.f32 %v2293_v50, %v2197_v59  ;;  %v2368_v39 = vadd.f32 %v2367_v13, %v2199_v24 }
 0x20a   : > { %v1882_v14 = vmax.f32 %v1458_v3, 0.0  ;;  %v1884_v21 = vmax.f32 %v1715_v32, 0.0  ;;  %v1462_v15 = vadd.f32 %v1461_v7, %v3603_v44  ;;  %v1719_v16 = vadd.f32 %v1718_v36, %v3603_v44 }
 0x20b   : > { %v2201_v62 = vmul.f32 %v2055_v12, %v1881_v9  ;;  %v2203_v33 = vmul.f32 %v2055_v12, %v1883_v8  ;;  %v1463_v38 = vpop.f32.mrf.mxu0  ;;  %v1720_v18 = vpop.f32.mrf.mxu1  ;;  %v2331_v54 = vadd.f32 %v2330_v1, %v2198_v20  ;;  %v2405_v31 = vadd.f32 %v2404_v17, %v2200_v60 }
 0x20c   : > { %v1885_v40 = vmax.f32 %v1462_v15, 0.0  ;;  %v1887_v19 = vmax.f32 %v1719_v16, 0.0  ;;  %v1464_v23 = vadd.f32 %v1463_v38, %v3603_v44  ;;  %v1721_v56 = vadd.f32 %v1720_v18, %v3603_v44  ;;  %v2065_v20 = vpop.permute.xlu0 %2064 }
 0x20d   : > { %v1467_v22 = vpop.f32.mrf.mxu0  ;;  %v1724_v58 = vpop.f32.mrf.mxu1  ;;  %v2295_v63 = vadd.f32 %v2294_v43, %v2201_v62  ;;  %v2369_v29 = vadd.f32 %v2368_v39, %v2203_v33  ;;  %v2202_v57 = vmul.f32 %v2055_v12, %v1882_v14  ;;  %v2204_v10 = vmul.f32 %v2055_v12, %v1884_v21 }
 0x20e   : > { %v1886_v45 = vmax.f32 %v1464_v23, 0.0  ;;  %v1888_v25 = vmax.f32 %v1721_v56, 0.0  ;;  %v1468_v50 = vadd.f32 %v1467_v22, %v3605_v37  ;;  %v1725_v13 = vadd.f32 %v1724_v58, %v3605_v37 }
 0x20f   : > { %v1469_v27 = vpop.f32.mrf.mxu0  ;;  %v1726_v61 = vpop.f32.mrf.mxu1  ;;  %v2205_v55 = vmul.f32 %v2060_v28, %v1885_v40  ;;  %v2207_v0 = vmul.f32 %v2060_v28, %v1887_v19  ;;  %v2332_v36 = vadd.f32 %v2331_v54, %v2202_v57  ;;  %v2406_v12 = vadd.f32 %v2405_v31, %v2204_v10 }
 0x210   : > { %v1470_v51 = vadd.f32 %v1469_v27, %v3605_v37  ;;  %v1727_v44 = vadd.f32 %v1726_v61, %v3605_v37  ;;  %v2206_v26 = vmul.f32 %v2060_v28, %v1886_v45  ;;  %v2208_v49 = vmul.f32 %v2060_v28, %v1888_v25  ;;  %v2070_v19 = vpop.permute.xlu1 %2069 }
 0x211   : > { %v1889_v59 = vmax.f32 %v1468_v50, 0.0  ;;  %v1891_v24 = vmax.f32 %v1725_v13, 0.0  ;;  %v1473_v3 = vpop.f32.mrf.mxu0  ;;  %v1730_v32 = vpop.f32.mrf.mxu1  ;;  %v2296_v37 = vadd.f32 %v2295_v63, %v2205_v55  ;;  %v2370_v1 = vadd.f32 %v2369_v29, %v2207_v0 }
 0x212   : > { %v1890_v60 = vmax.f32 %v1470_v51, 0.0  ;;  %v1892_v9 = vmax.f32 %v1727_v44, 0.0  ;;  %v1474_v8 = vadd.f32 %v1473_v3, %v3607_v48  ;;  %v1731_v7 = vadd.f32 %v1730_v32, %v3607_v48  ;;  %v2075_v51 = vpop.permute.xlu0 %2074 }
 0x213   : > { %v2209_v14 = vmul.f32 %v2065_v20, %v1889_v59  ;;  %v2211_v21 = vmul.f32 %v2065_v20, %v1891_v24  ;;  %v1475_v15 = vpop.f32.mrf.mxu0  ;;  %v1732_v16 = vpop.f32.mrf.mxu1  ;;  %v2333_v33 = vadd.f32 %v2332_v36, %v2206_v26  ;;  %v2407_v38 = vadd.f32 %v2406_v12, %v2208_v49 }
 0x214   : > { %v1893_v17 = vmax.f32 %v1474_v8, 0.0  ;;  %v1895_v62 = vmax.f32 %v1731_v7, 0.0  ;;  %v1476_v18 = vadd.f32 %v1475_v15, %v3607_v48  ;;  %v1733_v43 = vadd.f32 %v1732_v16, %v3607_v48 }
 0x215   : > { %v1479_v39 = vpop.f32.mrf.mxu0  ;;  %v1736_v40 = vpop.f32.mrf.mxu1  ;;  %v2297_v23 = vadd.f32 %v2296_v37, %v2209_v14  ;;  %v2371_v54 = vadd.f32 %v2370_v1, %v2211_v21  ;;  %v2210_v31 = vmul.f32 %v2065_v20, %v1890_v60  ;;  %v2212_v56 = vmul.f32 %v2065_v20, %v1892_v9 }
 0x216   : > { %v1894_v22 = vmax.f32 %v1476_v18, 0.0  ;;  %v1896_v58 = vmax.f32 %v1733_v43, 0.0  ;;  %v1480_v28 = vadd.f32 %v1479_v39, %v3609_v4  ;;  %v1737_v63 = vadd.f32 %v1736_v40, %v3609_v4 }
 0x217   : > { %v1481_v29 = vpop.f32.mrf.mxu0  ;;  %v1738_v57 = vpop.f32.mrf.mxu1  ;;  %v2213_v10 = vmul.f32 %v2070_v19, %v1893_v17  ;;  %v2215_v45 = vmul.f32 %v2070_v19, %v1895_v62  ;;  %v2334_v24 = vadd.f32 %v2333_v33, %v2210_v31  ;;  %v2408_v3 = vadd.f32 %v2407_v38, %v2212_v56 }
 0x218   : > { %v1482_v25 = vadd.f32 %v1481_v29, %v3609_v4  ;;  %v1739_v48 = vadd.f32 %v1738_v57, %v3609_v4  ;;  %v2214_v50 = vmul.f32 %v2070_v19, %v1894_v22  ;;  %v2216_v13 = vmul.f32 %v2070_v19, %v1896_v58  ;;  %v2080_v4 = vpop.permute.xlu1 %2079 }
 0x219   : > { %v1897_v27 = vmax.f32 %v1480_v28, 0.0  ;;  %v1899_v61 = vmax.f32 %v1737_v63, 0.0  ;;  %v1485_v55 = vpop.f32.mrf.mxu0  ;;  %v1742_v0 = vpop.f32.mrf.mxu1  ;;  %v2298_v8 = vadd.f32 %v2297_v23, %v2213_v10  ;;  %v2372_v7 = vadd.f32 %v2371_v54, %v2215_v45 }
 0x21a   : > { %v1898_v44 = vmax.f32 %v1482_v25, 0.0  ;;  %v1900_v26 = vmax.f32 %v1739_v48, 0.0  ;;  %v1486_v49 = vadd.f32 %v1485_v55, %v3611_v6  ;;  %v1743_v59 = vadd.f32 %v1742_v0, %v3611_v6  ;;  %v2085_v54 = vpop.permute.xlu0 %2084 }
 0x21b   : > { %v2217_v32 = vmul.f32 %v2075_v51, %v1897_v27  ;;  %v2219_v20 = vmul.f32 %v2075_v51, %v1899_v61  ;;  %v1487_v60 = vpop.f32.mrf.mxu0  ;;  %v1744_v9 = vpop.f32.mrf.mxu1  ;;  %v2335_v14 = vadd.f32 %v2334_v24, %v2214_v50  ;;  %v2409_v21 = vadd.f32 %v2408_v3, %v2216_v13 }
 0x21c   : > { %v1901_v36 = vmax.f32 %v1486_v49, 0.0  ;;  %v1903_v12 = vmax.f32 %v1743_v59, 0.0  ;;  %v1488_v15 = vadd.f32 %v1487_v60, %v3611_v6  ;;  %v1745_v16 = vadd.f32 %v1744_v9, %v3611_v6  ;;  %v2090_v45 = vpop.permute.xlu1 %2089 }
 0x21d   : > { %v1491_v37 = vpop.f32.mrf.mxu0  ;;  %v1748_v1 = vpop.f32.mrf.mxu1  ;;  %v2299_v17 = vadd.f32 %v2298_v8, %v2217_v32  ;;  %v2373_v62 = vadd.f32 %v2372_v7, %v2219_v20  ;;  %v2218_v33 = vmul.f32 %v2075_v51, %v1898_v44  ;;  %v2220_v38 = vmul.f32 %v2075_v51, %v1900_v26 }
 0x21e   : > { %v1902_v18 = vmax.f32 %v1488_v15, 0.0  ;;  %v1904_v43 = vmax.f32 %v1745_v16, 0.0  ;;  %v1492_v39 = vadd.f32 %v1491_v37, %v3613_v34  ;;  %v1749_v40 = vadd.f32 %v1748_v1, %v3613_v34 }
 0x21f   : > { %v1493_v19 = vpop.f32.mrf.mxu0  ;;  %v1750_v23 = vpop.f32.mrf.mxu1  ;;  %v2221_v31 = vmul.f32 %v2080_v4, %v1901_v36  ;;  %v2223_v56 = vmul.f32 %v2080_v4, %v1903_v12  ;;  %v2336_v27 = vadd.f32 %v2335_v14, %v2218_v33  ;;  %v2410_v61 = vadd.f32 %v2409_v21, %v2220_v38 }
 0x220   : > { %v1494_v22 = vadd.f32 %v1493_v19, %v3613_v34  ;;  %v1751_v6 = vadd.f32 %v1750_v23, %v3613_v34  ;;  %v2222_v58 = vmul.f32 %v2080_v4, %v1902_v18  ;;  %v2224_v28 = vmul.f32 %v2080_v4, %v1904_v43  ;;  %v2095_v4 = vpop.permute.xlu0 %2094 }
 0x221   : > { %v1905_v63 = vmax.f32 %v1492_v39, 0.0  ;;  %v1907_v29 = vmax.f32 %v1749_v40, 0.0  ;;  %v1497_v57 = vpop.f32.mrf.mxu0  ;;  %v1754_v10 = vpop.f32.mrf.mxu1  ;;  %v2300_v34 = vadd.f32 %v2299_v17, %v2221_v31  ;;  %v2374_v26 = vadd.f32 %v2373_v62, %v2223_v56 }
 0x222   : > { %v1906_v25 = vmax.f32 %v1494_v22, 0.0  ;;  %v1908_v48 = vmax.f32 %v1751_v6, 0.0  ;;  %v1498_v50 = vadd.f32 %v1497_v57, %v3615_v35  ;;  %v1755_v13 = vadd.f32 %v1754_v10, %v3615_v35  ;;  %v2100_v17 = vpop.permute.xlu1 %2099 }
 0x223   : > { %v2225_v55 = vmul.f32 %v2085_v54, %v1905_v63  ;;  %v2227_v0 = vmul.f32 %v2085_v54, %v1907_v29  ;;  %v1499_v51 = vpop.f32.mrf.mxu0  ;;  %v1756_v44 = vpop.f32.mrf.mxu1  ;;  %v2337_v24 = vadd.f32 %v2336_v27, %v2222_v58  ;;  %v2411_v3 = vadd.f32 %v2410_v61, %v2224_v28 }
 0x224   : > { %v1909_v49 = vmax.f32 %v1498_v50, 0.0  ;;  %v1911_v59 = vmax.f32 %v1755_v13, 0.0  ;;  %v1500_v32 = vadd.f32 %v1499_v51, %v3615_v35  ;;  %v1757_v20 = vadd.f32 %v1756_v44, %v3615_v35  ;;  %v2105_v10 = vpop.permute.xlu0 %2104 }
 0x225   : > { %v1503_v60 = vpop.f32.mrf.mxu0  ;;  %v1760_v9 = vpop.f32.mrf.mxu1  ;;  %v2301_v8 = vadd.f32 %v2300_v34, %v2225_v55  ;;  %v2375_v7 = vadd.f32 %v2374_v26, %v2227_v0  ;;  %v2226_v36 = vmul.f32 %v2085_v54, %v1906_v25  ;;  %v2228_v12 = vmul.f32 %v2085_v54, %v1908_v48 }
 0x226   : > { %v1910_v14 = vmax.f32 %v1500_v32, 0.0  ;;  %v1912_v21 = vmax.f32 %v1757_v20, 0.0  ;;  %v1504_v15 = vadd.f32 %v1503_v60, %v3617_v42  ;;  %v1761_v16 = vadd.f32 %v1760_v9, %v3617_v42  ;;  %v2110_v51 = vpop.permute.xlu1 %2109 }
 0x227   : > { %v1505_v37 = vpop.f32.mrf.mxu0  ;;  %v1762_v1 = vpop.f32.mrf.mxu1  ;;  %v2229_v62 = vmul.f32 %v2090_v45, %v1909_v49  ;;  %v2231_v33 = vmul.f32 %v2090_v45, %v1911_v59  ;;  %v2338_v6 = vadd.f32 %v2337_v24, %v2226_v36  ;;  %v2412_v58 = vadd.f32 %v2411_v3, %v2228_v12 }
 0x228   : > { %v1506_v35 = vadd.f32 %v1505_v37, %v3617_v42  ;;  %v1763_v38 = vadd.f32 %v1762_v1, %v3617_v42  ;;  %v2230_v18 = vmul.f32 %v2090_v45, %v1910_v14  ;;  %v2232_v43 = vmul.f32 %v2090_v45, %v1912_v21 }
 0x229   : > { %v1913_v39 = vmax.f32 %v1504_v15, 0.0  ;;  %v1915_v40 = vmax.f32 %v1761_v16, 0.0  ;;  %v1509_v19 = vpop.f32.mrf.mxu0  ;;  %v1766_v23 = vpop.f32.mrf.mxu1  ;;  %v2302_v42 = vadd.f32 %v2301_v8, %v2229_v62  ;;  %v2376_v25 = vadd.f32 %v2375_v7, %v2231_v33 }
 0x22a   : > { %v1914_v54 = vmax.f32 %v1506_v35, 0.0  ;;  %v1916_v31 = vmax.f32 %v1763_v38, 0.0  ;;  %v1510_v56 = vadd.f32 %v1509_v19, %v3619_v41  ;;  %v1767_v22 = vadd.f32 %v1766_v23, %v3619_v41  ;;  %v3713_v16 = vpop.permute.xlu0 %2114 }
 0x22b   : > { %v2233_v28 = vmul.f32 %v2095_v4, %v1913_v39  ;;  %v2235_v63 = vmul.f32 %v2095_v4, %v1915_v40  ;;  %v1511_v29 = vpop.f32.mrf.mxu0  ;;  %v1768_v57 = vpop.f32.mrf.mxu1  ;;  %v2339_v50 = vadd.f32 %v2338_v6, %v2230_v18  ;;  %v2413_v13 = vadd.f32 %v2412_v58, %v2232_v43 }
 0x22c   : > { %v1917_v45 = vmax.f32 %v1510_v56, 0.0  ;;  %v1919_v48 = vmax.f32 %v1767_v22, 0.0  ;;  %v1512_v27 = vadd.f32 %v1511_v29, %v3619_v41  ;;  %v1769_v61 = vadd.f32 %v1768_v57, %v3619_v41  ;;  %v3717_v40 = vpop.permute.xlu1 %2119 }
 0x22d   : > { %v1515_v55 = vpop.f32.mrf.mxu0  ;;  %v1772_v0 = vpop.f32.mrf.mxu1  ;;  %v2303_v44 = vadd.f32 %v2302_v42, %v2233_v28  ;;  %v2377_v34 = vadd.f32 %v2376_v25, %v2235_v63  ;;  %v2234_v26 = vmul.f32 %v2095_v4, %v1914_v54  ;;  %v2236_v49 = vmul.f32 %v2095_v4, %v1916_v31 }
 0x22e   : > { %v1918_v59 = vmax.f32 %v1512_v27, 0.0  ;;  %v1920_v24 = vmax.f32 %v1769_v61, 0.0  ;;  %v1516_v3 = vadd.f32 %v1515_v55, %v3621_v52  ;;  %v1773_v32 = vadd.f32 %v1772_v0, %v3621_v52  ;;  %v3723_v61 = vpop.permute.xlu0 %1300 }
 0x22f   : > { %v1517_v20 = vpop.f32.mrf.mxu0  ;;  %v1774_v60 = vpop.f32.mrf.mxu1  ;;  %v2237_v9 = vmul.f32 %v2100_v17, %v1917_v45  ;;  %v2239_v8 = vmul.f32 %v2100_v17, %v1919_v48  ;;  %v2340_v35 = vadd.f32 %v2339_v50, %v2234_v26  ;;  %v2414_v38 = vadd.f32 %v2413_v13, %v2236_v49 }
 0x230   : > { %v1518_v7 = vadd.f32 %v1517_v20, %v3621_v52  ;;  %v1775_v41 = vadd.f32 %v1774_v60, %v3621_v52  ;;  %v2238_v36 = vmul.f32 %v2100_v17, %v1918_v59  ;;  %v2240_v12 = vmul.f32 %v2100_v17, %v1920_v24 }
 0x231   : > { %v1921_v14 = vmax.f32 %v1516_v3, 0.0  ;;  %v1923_v21 = vmax.f32 %v1773_v32, 0.0  ;;  %v1521_v15 = vpop.f32.mrf.mxu0  ;;  %v1778_v4 = vpop.f32.mrf.mxu1  ;;  %v2304_v17 = vadd.f32 %v2303_v44, %v2237_v9  ;;  %v2378_v19 = vadd.f32 %v2377_v34, %v2239_v8 }
 0x232   : > { %v1922_v37 = vmax.f32 %v1518_v7, 0.0  ;;  %v1924_v1 = vmax.f32 %v1775_v41, 0.0  ;;  %v1522_v62 = vadd.f32 %v1521_v15, %v3623_v53  ;;  %v1779_v33 = vadd.f32 %v1778_v4, %v3623_v53  ;;  %v3727_v3 = vpop.permute.xlu1 %2124 }
 0x233   : > { %v2241_v18 = vmul.f32 %v2105_v10, %v1921_v14  ;;  %v2243_v43 = vmul.f32 %v2105_v10, %v1923_v21  ;;  %v1523_v39 = vpop.f32.mrf.mxu0  ;;  %v1780_v52 = vpop.f32.mrf.mxu1  ;;  %v2341_v31 = vadd.f32 %v2340_v35, %v2238_v36  ;;  %v2415_v56 = vadd.f32 %v2414_v38, %v2240_v12 }
 0x234   : > { %v1925_v23 = vmax.f32 %v1522_v62, 0.0  ;;  %v1927_v54 = vmax.f32 %v1779_v33, 0.0  ;;  %v1524_v22 = vadd.f32 %v1523_v39, %v3623_v53  ;;  %v1781_v6 = vadd.f32 %v1780_v52, %v3623_v53  ;;  %v3735_v38 = vpop.permute.xlu0 %1305 }
 0x235   : > { %v1527_v58 = vpop.f32.mrf.mxu0  ;;  %v1784_v28 = vpop.f32.mrf.mxu1  ;;  %v2305_v63 = vadd.f32 %v2304_v17, %v2241_v18  ;;  %v2379_v29 = vadd.f32 %v2378_v19, %v2243_v43  ;;  %v2242_v57 = vmul.f32 %v2105_v10, %v1922_v37  ;;  %v2244_v42 = vmul.f32 %v2105_v10, %v1924_v1 }
 0x236   : > { %v1926_v25 = vmax.f32 %v1524_v22, 0.0  ;;  %v1928_v45 = vmax.f32 %v1781_v6, 0.0  ;;  %v1528_v48 = vadd.f32 %v1527_v58, %v3625_v46  ;;  %v1785_v50 = vadd.f32 %v1784_v28, %v3625_v46  ;;  %v2130_v22 = vpop.permute.xlu1 %2129 }
 0x237   : > { %v1529_v13 = vpop.f32.mrf.mxu0  ;;  %v1786_v27 = vpop.f32.mrf.mxu1  ;;  %v2245_v55 = vmul.f32 %v2110_v51, %v1925_v23  ;;  %v2247_v0 = vmul.f32 %v2110_v51, %v1927_v54  ;;  %v2342_v8 = vadd.f32 %v2341_v31, %v2242_v57  ;;  %v2416_v7 = vadd.f32 %v2415_v56, %v2244_v42 }
 0x238   : > { %v1530_v53 = vadd.f32 %v1529_v13, %v3625_v46  ;;  %v1787_v44 = vadd.f32 %v1786_v27, %v3625_v46  ;;  %v2246_v34 = vmul.f32 %v2110_v51, %v1926_v25  ;;  %v2248_v26 = vmul.f32 %v2110_v51, %v1928_v45 }
 0x239   : > { %v1929_v49 = vmax.f32 %v1528_v48, 0.0  ;;  %v1931_v10 = vmax.f32 %v1785_v50, 0.0  ;;  %v1533_v59 = vpop.f32.mrf.mxu0  ;;  %v1790_v24 = vpop.f32.mrf.mxu1  ;;  %v2306_v12 = vadd.f32 %v2305_v63, %v2245_v55  ;;  %v2380_v14 = vadd.f32 %v2379_v29, %v2247_v0 }
 0x23a   : > { %v1930_v32 = vmax.f32 %v1530_v53, 0.0  ;;  %v1932_v20 = vmax.f32 %v1787_v44, 0.0  ;;  %v1534_v60 = vadd.f32 %v1533_v59, %v3627_v30  ;;  %v1791_v9 = vadd.f32 %v1790_v24, %v3627_v30 }
 0x23b   : > { %v2249_v41 = vmul.f32 %v3713_v16, %v1929_v49  ;;  %v2251_v46 = vmul.f32 %v3713_v16, %v1931_v10  ;;  %v1535_v36 = vpop.f32.mrf.mxu0  ;;  %v1792_v51 = vpop.f32.mrf.mxu1  ;;  %v2343_v4 = vadd.f32 %v2342_v8, %v2246_v34  ;;  %v2417_v37 = vadd.f32 %v2416_v7, %v2248_v26 }
 0x23c   : > { %v1933_v21 = vmax.f32 %v1534_v60, 0.0  ;;  %v1935_v15 = vmax.f32 %v1791_v9, 0.0  ;;  %v1536_v1 = vadd.f32 %v1535_v36, %v3627_v30  ;;  %v1793_v62 = vadd.f32 %v1792_v51, %v3627_v30  ;;  %v3751_v34 = vpop.permute.xlu0 %1310  ;;  %v2135_v8 = vpop.permute.xlu1 %2134 }
 0x23d   : > { %v1539_v33 = vpop.f32.mrf.mxu0  ;;  %v1796_v35 = vpop.f32.mrf.mxu1  ;;  %v2307_v18 = vadd.f32 %v2306_v12, %v2249_v41  ;;  %v2381_v43 = vadd.f32 %v2380_v14, %v2251_v46  ;;  %v2250_v39 = vmul.f32 %v3713_v16, %v1930_v32  ;;  %v2252_v52 = vmul.f32 %v3713_v16, %v1932_v20 }
 0x23e   : > { %v1934_v17 = vmax.f32 %v1536_v1, 0.0  ;;  %v1936_v19 = vmax.f32 %v1793_v62, 0.0  ;;  %v1540_v23 = vadd.f32 %v1539_v33, %v3629_v47  ;;  %v1797_v54 = vadd.f32 %v1796_v35, %v3629_v47 }
 0x23f   : > { %v1541_v31 = vpop.f32.mrf.mxu0  ;;  %v1798_v56 = vpop.f32.mrf.mxu1  ;;  %v2253_v30 = vmul.f32 %v3717_v40, %v1933_v21  ;;  %v2255_v6 = vmul.f32 %v3717_v40, %v1935_v15  ;;  %v2344_v27 = vadd.f32 %v2343_v4, %v2250_v39  ;;  %v2418_v55 = vadd.f32 %v2417_v37, %v2252_v52 }
 0x240   : > { %v1542_v58 = vadd.f32 %v1541_v31, %v3629_v47  ;;  %v1799_v28 = vadd.f32 %v1798_v56, %v3629_v47  ;;  %v2254_v63 = vmul.f32 %v3717_v40, %v1934_v17  ;;  %v2256_v16 = vmul.f32 %v3717_v40, %v1936_v19  ;;  %v1316_v52 = vpop.permute.xlu0 %1315 }
 0x241   : > { %v1937_v29 = vmax.f32 %v1540_v23, 0.0  ;;  %v1939_v57 = vmax.f32 %v1797_v54, 0.0  ;;  %v1545_v42 = vpop.f32.mrf.mxu0  ;;  %v1802_v25 = vpop.f32.mrf.mxu1  ;;  %v2308_v40 = vadd.f32 %v2307_v18, %v2253_v30  ;;  %v2382_v26 = vadd.f32 %v2381_v43, %v2255_v6 }
 0x242   : > { %v1938_v45 = vmax.f32 %v1542_v58, 0.0  ;;  %v1940_v48 = vmax.f32 %v1799_v28, 0.0  ;;  %v1546_v50 = vadd.f32 %v1545_v42, %v3631_v2  ;;  %v1803_v13 = vadd.f32 %v1802_v25, %v3631_v2  ;;  %v2140_v28 = vpop.permute.xlu1 %2139 }
 0x243   : > { %v2257_v0 = vmul.f32 %v3727_v3, %v1937_v29  ;;  %v2259_v47 = vmul.f32 %v3727_v3, %v1939_v57  ;;  %v1547_v53 = vpop.f32.mrf.mxu0  ;;  %v1804_v44 = vpop.f32.mrf.mxu1  ;;  %v2345_v59 = vadd.f32 %v2344_v27, %v2254_v63  ;;  %v2419_v24 = vadd.f32 %v2418_v55, %v2256_v16 }
 0x244   : > { %v1941_v49 = vmax.f32 %v1546_v50, 0.0  ;;  %v1943_v10 = vmax.f32 %v1803_v13, 0.0  ;;  %v1548_v32 = vadd.f32 %v1547_v53, %v3631_v2  ;;  %v1805_v20 = vadd.f32 %v1804_v44, %v3631_v2 }
 0x245   : > { %v1551_v60 = vpop.f32.mrf.mxu0  ;;  %v1808_v9 = vpop.f32.mrf.mxu1  ;;  %v2309_v7 = vadd.f32 %v2308_v40, %v2257_v0  ;;  %v2383_v41 = vadd.f32 %v2382_v26, %v2259_v47  ;;  %v2258_v46 = vmul.f32 %v3727_v3, %v1938_v45  ;;  %v2260_v36 = vmul.f32 %v3727_v3, %v1940_v48 }
 0x246   : > { %v1942_v51 = vmax.f32 %v1548_v32, 0.0  ;;  %v1944_v12 = vmax.f32 %v1805_v20, 0.0  ;;  %v1552_v14 = vadd.f32 %v1551_v60, %v3723_v61  ;;  %v1809_v21 = vadd.f32 %v1808_v9, %v3723_v61 }
 0x247   : > { %v1553_v15 = vpop.f32.mrf.mxu0  ;;  %v1810_v4 = vpop.f32.mrf.mxu1  ;;  %v2261_v37 = vmul.f32 %v2130_v22, %v1941_v49  ;;  %v2263_v1 = vmul.f32 %v2130_v22, %v1943_v10  ;;  %v2346_v31 = vadd.f32 %v2345_v59, %v2258_v46  ;;  %v2420_v56 = vadd.f32 %v2419_v24, %v2260_v36 }
 0x248   : > { %v1554_v2 = vadd.f32 %v1553_v15, %v3723_v61  ;;  %v1811_v62 = vadd.f32 %v1810_v4, %v3723_v61  ;;  %v2262_v33 = vmul.f32 %v2130_v22, %v1942_v51  ;;  %v2264_v35 = vmul.f32 %v2130_v22, %v1944_v12  ;;  %v1321_v49 = vpop.permute.xlu0 %1320 }
 0x249   : > { %v1945_v18 = vmax.f32 %v1552_v14, 0.0  ;;  %v1947_v43 = vmax.f32 %v1809_v21, 0.0  ;;  %v1557_v39 = vpop.f32.mrf.mxu0  ;;  %v1814_v3 = vpop.f32.mrf.mxu1  ;;  %v2310_v61 = vadd.f32 %v2309_v7, %v2261_v37  ;;  %v2384_v63 = vadd.f32 %v2383_v41, %v2263_v1 }
 0x24a   : > { %v1946_v17 = vmax.f32 %v1554_v2, 0.0  ;;  %v1948_v19 = vmax.f32 %v1811_v62, 0.0  ;;  %v1558_v23 = vadd.f32 %v1557_v39, %v3735_v38  ;;  %v1815_v54 = vadd.f32 %v1814_v3, %v3735_v38  ;;  %v2145_v41 = vpop.permute.xlu1 %2144 }
 0x24b   : > { %v2265_v30 = vmul.f32 %v2135_v8, %v1945_v18  ;;  %v1559_v6 = vpop.f32.mrf.mxu0  ;;  %v1816_v58 = vpop.f32.mrf.mxu1  ;;  %v2347_v29 = vadd.f32 %v2346_v31, %v2262_v33  ;;  %v2421_v57 = vadd.f32 %v2420_v56, %v2264_v35  ;;  %v2267_v13 = vmul.f32 %v2135_v8, %v1947_v43 }
 0x24c   : > { %v1949_v22 = vmax.f32 %v1558_v23, 0.0  ;;  %v1951_v16 = vmax.f32 %v1815_v54, 0.0  ;;  %v1560_v42 = vadd.f32 %v1559_v6, %v3735_v38  ;;  %v1817_v25 = vadd.f32 %v1816_v58, %v3735_v38 }
 0x24d   : > { %v1563_v45 = vpop.f32.mrf.mxu0  ;;  %v1820_v48 = vpop.f32.mrf.mxu1  ;;  %v2311_v50 = vadd.f32 %v2310_v61, %v2265_v30  ;;  %v2266_v27 = vmul.f32 %v2135_v8, %v1946_v17  ;;  %v2268_v55 = vmul.f32 %v2135_v8, %v1948_v19  ;;  %v2385_v14 = vadd.f32 %v2384_v63, %v2267_v13 }
 0x24e   : > { %v1950_v0 = vmax.f32 %v1560_v42, 0.0  ;;  %v1952_v47 = vmax.f32 %v1817_v25, 0.0  ;;  %v1564_v53 = vadd.f32 %v1563_v45, %v3751_v34  ;;  %v1821_v44 = vadd.f32 %v1820_v48, %v3751_v34  ;;  %v2150_v17 = vpop.permute.xlu0 %2149  ;;  %v2155_v45 = vpop.permute.xlu1 %2154 }
 0x24f   : > { %v1565_v40 = vpop.f32.mrf.mxu0  ;;  %v1822_v26 = vpop.f32.mrf.mxu1  ;;  %v2269_v10 = vmul.f32 %v2140_v28, %v1949_v22  ;;  %v2271_v59 = vmul.f32 %v2140_v28, %v1951_v16  ;;  %v2348_v21 = vadd.f32 %v2347_v29, %v2266_v27  ;;  %v2422_v15 = vadd.f32 %v2421_v57, %v2268_v55 }
 0x250   : > { %v1566_v24 = vadd.f32 %v1565_v40, %v3751_v34  ;;  %v1823_v38 = vadd.f32 %v1822_v26, %v3751_v34  ;;  %v2270_v32 = vmul.f32 %v2140_v28, %v1950_v0  ;;  %v2272_v20 = vmul.f32 %v2140_v28, %v1952_v47 }
 0x251   : > { %v1953_v60 = vmax.f32 %v1564_v53, 0.0  ;;  %v1955_v9 = vmax.f32 %v1821_v44, 0.0  ;;  %v1569_v8 = vpop.f32.mrf.mxu0  ;;  %v1826_v7 = vpop.f32.mrf.mxu1  ;;  %v2312_v1 = vadd.f32 %v2311_v50, %v2269_v10  ;;  %v2386_v33 = vadd.f32 %v2385_v14, %v2271_v59 }
 0x252   : > { %v1954_v46 = vmax.f32 %v1566_v24, 0.0  ;;  %v1956_v36 = vmax.f32 %v1823_v38, 0.0  ;;  %v1570_v51 = vadd.f32 %v1569_v8, %v1316_v52  ;;  %v1827_v12 = vadd.f32 %v1826_v7, %v1316_v52 }
 0x253   : > { %v1571_v4 = vpop.f32.mrf.mxu0  ;;  %v1828_v37 = vpop.f32.mrf.mxu1  ;;  %v2273_v2 = vmul.f32 %v2145_v41, %v1953_v60  ;;  %v2349_v35 = vadd.f32 %v2348_v21, %v2270_v32  ;;  %v2423_v19 = vadd.f32 %v2422_v15, %v2272_v20  ;;  %v2275_v23 = vmul.f32 %v2145_v41, %v1955_v9 }
 0x254   : > { %v1957_v62 = vmax.f32 %v1570_v51, 0.0  ;;  %v1959_v34 = vmax.f32 %v1827_v12, 0.0  ;;  %v1572_v18 = vadd.f32 %v1571_v4, %v1316_v52  ;;  %v1829_v43 = vadd.f32 %v1828_v37, %v1316_v52 }
 0x255   : > { %v1575_v39 = vpop.f32.mrf.mxu0  ;;  %v1832_v3 = vpop.f32.mrf.mxu1  ;;  %v2274_v54 = vmul.f32 %v2145_v41, %v1954_v46  ;;  %v2276_v31 = vmul.f32 %v2145_v41, %v1956_v36  ;;  %v2313_v63 = vadd.f32 %v2312_v1, %v2273_v2  ;;  %v2387_v48 = vadd.f32 %v2386_v33, %v2275_v23 }
 0x256   : > { %v2277_v56 = vmul.f32 %v2150_v17, %v1957_v62  ;;  %v1958_v30 = vmax.f32 %v1572_v18, 0.0  ;;  %v1960_v6 = vmax.f32 %v1829_v43, 0.0  ;;  %v1576_v58 = vadd.f32 %v1575_v39, %v1321_v49 }
 0x257   : > { %v1577_v28 = vpop.f32.mrf.mxu0  ;;  %v1834_v61 = vpop.f32.mrf.mxu1  ;;  %v2279_v22 = vmul.f32 %v2150_v17, %v1959_v34  ;;  %v1833_v16 = vadd.f32 %v1832_v3, %v1321_v49  ;;  %v2350_v50 = vadd.f32 %v2349_v35, %v2274_v54  ;;  %v2424_v55 = vadd.f32 %v2423_v19, %v2276_v31 }
 0x258   : > { %v1578_v29 = vadd.f32 %v1577_v28, %v1321_v49  ;;  %v2278_v57 = vmul.f32 %v2150_v17, %v1958_v30  ;;  %v2280_v42 = vmul.f32 %v2150_v17, %v1960_v6  ;;  %v1961_v52 = vmax.f32 %v1576_v58, 0.0 }
 0x259   : > { %v1835_v25 = vadd.f32 %v1834_v61, %v1321_v49  ;;  %v1963_v13 = vmax.f32 %v1833_v16, 0.0  ;;  %v2314_v0 = vadd.f32 %v2313_v63, %v2277_v56  ;;  %v2388_v44 = vadd.f32 %v2387_v48, %v2279_v22 }
 0x25a   : > { %v1962_v27 = vmax.f32 %v1578_v29, 0.0  ;;  %v2281_v47 = vmul.f32 %v2155_v45, %v1961_v52  ;;  %v2351_v40 = vadd.f32 %v2350_v50, %v2278_v57  ;;  %v2425_v59 = vadd.f32 %v2424_v55, %v2280_v42 }
 0x25b   : > { %v1964_v53 = vmax.f32 %v1835_v25, 0.0  ;;  %v2283_v26 = vmul.f32 %v2155_v45, %v1963_v13  ;;  %v2665_v15 = vmov 1966171168   ;;  %v2434_v3 = vstv %s2433_s13 }
 0x25c   : > { %v2282_v10 = vmul.f32 %v2155_v45, %v1962_v27  ;;  %v2315_v24 = vadd.f32 %v2314_v0, %v2281_v47  ;;  %v2446_v4 = vunpack.c.l.s4 %v2665_v15 }
 0x25d   : > { %v2284_v38 = vmul.f32 %v2155_v45, %v1964_v53  ;;  %v2389_v32 = vadd.f32 %v2388_v44, %v2283_v26 }
 0x25e   : > { %v2352_v20 = vadd.f32 %v2351_v40, %v2282_v10  ;;  %v2316_v60 = vrot.slane %v2315_v24, 4  ;;  %v2447_v43 = vunpack.c.0.s8 %v2446_v4 }
 0x25f   : > { %v2426_v49 = vadd.f32 %v2425_v59, %v2284_v38  ;;  %v2390_v9 = vrot.slane %v2389_v32, 4 }
 0x260   : > { %v2353_v8 = vrot.slane %v2352_v20, 4  ;;  %v2317_v7 = vadd.f32 %v2316_v60, %v2315_v24  ;;  %v2450_v30 = vsub.s32 %v2447_v43, %v2977_v11 }
 0x261   : > { %v2427_v41 = vrot.slane %v2426_v49, 4  ;;  %v2391_v46 = vadd.f32 %v2390_v9, %v2389_v32 }
 0x262   : > { %v2354_v36 = vadd.f32 %v2353_v8, %v2352_v20  ;;  %v2318_v51 = vrot.slane %v2317_v7, 2 }
 0x263   : > { %v2428_v12 = vadd.f32 %v2427_v41, %v2426_v49  ;;  %v2392_v14 = vrot.slane %v2391_v46, 2 }
 0x264   : > { %v2355_v21 = vrot.slane %v2354_v36, 2  ;;  %v2319_v37 = vadd.f32 %v2318_v51, %v2317_v7 }
 0x265   : > { %v2429_v1 = vrot.slane %v2428_v12, 2  ;;  %v2393_v2 = vadd.f32 %v2392_v14, %v2391_v46 }
 0x266   : > { %v2356_v62 = vadd.f32 %v2355_v21, %v2354_v36  ;;  %v2320_v34 = vrot.slane %v2319_v37, 1 }
 0x267   : > { %v2430_v33 = vadd.f32 %v2429_v1, %v2428_v12  ;;  %v2394_v35 = vrot.slane %v2393_v2, 1 }
 0x268   : > { %v2357_v18 = vrot.slane %v2356_v62, 1  ;;  %v2321_v39 = vadd.f32 %v2320_v34, %v2319_v37 }
 0x269   : > { %v2431_v17 = vrot.slane %v2430_v33, 1  ;;  %v2395_v19 = vadd.f32 %v2394_v35, %v2393_v2 }
 0x26a   : > { %v2358_v23 = vadd.f32 %v2357_v18, %v2356_v62  ;;  %v2435_v31 = vadd.f32 %v2434_v3, %v2321_v39 }
 0x26b   : > { %v2432_v54 = vadd.f32 %v2431_v17, %v2430_v33  ;;  %v2437_v6 = vadd.f32 %v2434_v3, %v2395_v19 }
 0x26c   : > { %v2436_v56 = vadd.f32 %v2434_v3, %v2358_v23 }
 0x26d   : > { %v2438_v58 = vadd.f32 %v2434_v3, %v2432_v54 }
 0x26e   : > { %v2443_v28 = vcombine.low %v2435_v31, %v2436_v56 }
 0x26f   : > { %v2444_v61 = vcombine.low %v2437_v6, %v2438_v58 }
 0x270   : > { %v2451_v63 = vrot.slane %v2443_v28, %v2450_v30 }
 0x271   : > { %v2458_v22 = vrot.slane %v2444_v61, %v2450_v30 }
 0x273   : > { %v2459_v16 = vcombine.low %v2451_v63, %v2458_v22 }
 0x275   : > { %v2466_v29 = vrot.slane %v2459_v16, %v2450_v30 }
 0x277   : > { %2472 = vst.msk [vmem:[%s272_s20] sm:$0xf] %vm2470_vm0, %v2466_v29 }
 0x278   : > { %2615 = shalt.err (!%p2612_p3)
}
 0x279   : > { %s2616_s10 = scalar_lea.hbm %s2486_s0, 64  ;;  %s2620_s17 = scalar_lea.hbm %s3813_s8, 128 }
 0x27a   : > { %p2617_p4 = scmp.ne.s32.totalorder %s2486_s0, %s2616_s10  ;;  %p2621_p9 = scmp.lt.s32.totalorder %s2486_s0, %s3813_s8 }
 0x27b   : > { %p2622_p10 = scmp.lt.s32.totalorder %s2620_s17, %s2616_s10 }
 0x27c   : > { %p2618_p7 = pnand %p2617_p4, %p2753_p5 }
 0x27d   : > { %p2623_p11 = por %p2622_p10, %p2621_p9 }
 0x27e   : > { %p2619_p8 = pneg %p2618_p7 }
 0x280   : > { %p2624_p12 = pnand %p2623_p11, %p2619_p8 }
 0x282   : > { %2627 = shalt.err (!%p2624_p12)
}
 0x283   : > { %2559 = dma.vmem_to_hbm [thread:$0]  (%p2753_p5), %s2489_s21, 64, %s2486_s0, %s2474_s24  }
 0x284 PF: > { %p2565_p13 = scmp.ge.s32.totalorder %s2662_s9, 2  ;;  %s2500_s20 = sand.u32 1, %s2650_s28  }
 0x285   : > { %s2501_s22 = scalar_lea.sflag [#allocation6], %s2500_s20 }
 0x286   : > { %p2562_p0 = pnand %p2565_p13, %p2757_p6 }
 0x288   : > { %p2563_p1 = pneg %p2562_p0 }
 0x28a   : > { %2645 = dma.done.wait (%p2563_p1), %s2501_s22, 64  }
 0x28b   : > { %2647 = vsyncadd (%p2563_p1), %s2501_s22, 4294967232  ;;  %p20_p2 = scmp.ge.s32.totalorder %s2740_s11, 4   ;;  %s3816_s28 = smov %s2654_s29 }
 0x28c   : > { %s3817_s29 = smov %s2658_s30  ;;  %s3818_s30 = smov %s2751_s14 }
 0x28d   : > { %s3819_s9 = smov %s2740_s11  ;;  %22 = sbr.rel (!%p20_p2) target bundleno = 5 (0x5), region = 83 }
 0x292   :  { %2506 = vsyncpa [#allocation6], 1 }
 0x293   :  { %2508 = vsyncpa [#allocation6 + $0x1], 1 }

</bundles_post_ra>
